<compile_context>
chip_gen: v6e
topology: v6e:2x2x1
jax: 0.10.0
libtpu: 0.0.40
codegen_flags: <defaults>
</compile_context>

<pallas_src>
import jax
import jax.numpy as jnp
from jax.experimental import pallas as pl
from jax.experimental.pallas import tpu as pltpu

LANE = 128            # narrow tail feature dims are zero-padded to this
NODE_PAD = 16         # bf16 packs 16 sublanes per vreg
MAX_SINGLE_BLOCK_NODES = 256


def _round_up(v, m):
    return ((v + m - 1) // m) * m


def _vmem_limit_bytes():
    cap = 128 * 1024 * 1024
    try:
        cap = int(getattr(pltpu.get_tpu_info(), "vmem_capacity_bytes", cap))
    except Exception:
        pass
    # ~75% of physical VMEM, capped at 100 MiB (v5e/v6e -> 96 MiB, v7x -> 48 MiB)
    return min((cap * 3) // 4, 100 * 1024 * 1024)


# ------------------------- fused forward kernel ----------------------------- #
def dialog_rater_kernel(
        x_ref,        # [Np, D]   bf16   node features (zero padded rows)
        a_ref,        # [Np, Np]  bf16   relation-r edge-count mask (exact)
        inv_deg_ref,  # [Np, 1]   f32    1/deg_r per node (0-safe)
        w_rel_ref,    # [D, H]    bf16   relation-r weight
        w_self_ref,   # [D, H]    bf16
        b_graph_ref,  # [1, H]    f32
        pool_ref,     # [B, Np]   bf16   0/1 graph-membership mask
        inv_cnt_ref,  # [B, 1]    f32    1/|graph b|
        w_gout_ref,   # [H, Gp]   bf16
        b_gout_ref,   # [1, Gp]   f32
        gamma_ref,    # [1, Gp]   f32
        beta_ref,     # [1, Gp]   f32
        w1_ref,       # [Gp, Hdp] bf16
        b1_ref,       # [1, Hdp]  f32
        w2_ref,       # [Hdp, Op] bf16
        b2_ref,       # [1, Op]   f32
        out_ref,      # [B, Op]   f32
        acc_ref):     # [Np, H]   f32 scratch (RGCN accumulator)
    r = pl.program_id(0)

    # --- init with the self term: acc = X @ W_self + b -------------------- #
    @pl.when(r == 0)
    def _init():
        acc_ref[...] = jnp.dot(
            x_ref[...], w_self_ref[...],
            preferred_element_type=jnp.float32) + b_graph_ref[...]

    # --- per-relation message: ((A_r @ X) * 1/deg_r) @ W_rel[r] ----------- #
    msg = jnp.dot(a_ref[...], x_ref[...], preferred_element_type=jnp.float32)
    msg = (msg * inv_deg_ref[...]).astype(jnp.bfloat16)
    acc_ref[...] += jnp.dot(msg, w_rel_ref[...],
                            preferred_element_type=jnp.float32)

    # --- epilogue: ReLU, mean-pool, projection, BatchNorm1d, MLP head ----- #
    @pl.when(r == pl.num_programs(0) - 1)
    def _epilogue():
        h = jnp.maximum(acc_ref[...], 0.0).astype(jnp.bfloat16)
        # per-graph mean pool (0/1 mask matmul, 1/count scaling in f32)
        pooled = jnp.dot(pool_ref[...], h, preferred_element_type=jnp.float32)
        pooled = pooled * inv_cnt_ref[...]
        # projection to graph_out_dim (zero-padded to 128 lanes)
        g = jnp.dot(pooled.astype(jnp.bfloat16), w_gout_ref[...],
                    preferred_element_type=jnp.float32) + b_gout_ref[...]
        # BatchNorm1d, training-mode batch statistics (biased variance), f32
        mean = jnp.mean(g, axis=0, keepdims=True)
        var = jnp.mean((g - mean) ** 2, axis=0, keepdims=True)
        g = (g - mean) * jax.lax.rsqrt(var + 1e-5) * gamma_ref[...] + beta_ref[...]
        # MLP head: Linear -> ReLU -> Linear
        h1 = jnp.maximum(
            jnp.dot(g.astype(jnp.bfloat16), w1_ref[...],
                    preferred_element_type=jnp.float32) + b1_ref[...], 0.0)
        out_ref[...] = jnp.dot(h1.astype(jnp.bfloat16), w2_ref[...],
                               preferred_element_type=jnp.float32) + b2_ref[...]


# --------------------------------- wrapper ---------------------------------- #
def dialog_rater(x_pad, a_cnt, inv_deg, pool01, inv_cnt, params):
    """Single fused forward pass on pre-padded dense operands.

    x_pad   : [Np, D]      bf16 node features (zero rows on padding)
    a_cnt   : [R, Np, Np]  bf16 per-relation edge-count masks (exact integers)
    inv_deg : [R, Np, 1]   f32  per-relation 1/in-degree (0 for empty rows ok)
    pool01  : [B, Np]      bf16 0/1 graph-membership mask
    inv_cnt : [B, 1]       f32  1/|graph|
    """
    Np, D = x_pad.shape
    R = a_cnt.shape[0]
    H = params["w_self"].shape[1]
    B = pool01.shape[0]
    Gp = params["w_gout"].shape[1]
    Hdp = params["w1"].shape[1]
    Op = params["w2"].shape[1]
    assert Np <= MAX_SINGLE_BLOCK_NODES, (
        "single-node-block fused kernel; see TODO for the blocked variant")

    flops = (2 * Np * D * H                       # self term
             + R * (2 * Np * Np * D + 2 * Np * D * H)   # messages
             + 2 * B * Np * H + 2 * B * H * Gp           # pool + projection
             + 2 * B * Gp * Hdp + 2 * B * Hdp * Op)      # MLP head
    bytes_accessed = 2 * (Np * D + R * Np * Np + R * D * H + D * H + B * Np
                          + H * Gp + Gp * Hdp + Hdp * Op) \
        + 4 * (R * Np + H + 3 * Gp + Hdp + Op + B + B * Op)

    const2 = lambda shape: pl.BlockSpec(shape, lambda r: (0, 0))
    rel3 = lambda shape: pl.BlockSpec(shape, lambda r: (r, 0, 0))

    return pl.pallas_call(
        dialog_rater_kernel,
        out_shape=jax.ShapeDtypeStruct((B, Op), jnp.float32),
        grid=(R,),
        in_specs=[
            const2((Np, D)),                 # x
            rel3((None, Np, Np)),            # a_cnt[r]
            rel3((None, Np, 1)),             # inv_deg[r]
            rel3((None, D, H)),              # w_rel[r]
            const2((D, H)),                  # w_self
            const2((1, H)),                  # b_graph
            const2((B, Np)),                 # pool01
            const2((B, 1)),                  # inv_cnt
            const2((H, Gp)),                 # w_gout
            const2((1, Gp)),                 # b_gout
            const2((1, Gp)),                 # gamma
            const2((1, Gp)),                 # beta
            const2((Gp, Hdp)),               # w1
            const2((1, Hdp)),                # b1
            const2((Hdp, Op)),               # w2
            const2((1, Op)),                 # b2
        ],
        out_specs=const2((B, Op)),
        scratch_shapes=[pltpu.VMEM((Np, H), jnp.float32)],
        compiler_params=pltpu.CompilerParams(
            dimension_semantics=("arbitrary",),
            vmem_limit_bytes=_vmem_limit_bytes()),
        cost_estimate=pl.CostEstimate(
            flops=flops, transcendentals=B * Gp,
            bytes_accessed=bytes_accessed),
    )(x_pad, a_cnt, inv_deg, params["w_rel"], params["w_self"],
      params["b_graph"], pool01, inv_cnt, params["w_gout"], params["b_gout"],
      params["gamma"], params["beta"], params["w1"], params["b1"],
      params["w2"], params["b2"])


# --------------------------------- JAX glue --------------------------------- #
def build_graph_operands(x, edge_index, edge_type, node_graph_id, num_graphs,
                         n_relations, node_pad=NODE_PAD):
    """Dense, node-padded structure operands.

    Adjacency / pooling matrices are exact edge-count / 0-1 masks in bf16;
    the 1/deg and 1/|graph| normalizers stay f32 and are applied in-kernel.
    """
    n_nodes = x.shape[0]
    n_pad = _round_up(max(n_nodes, node_pad), node_pad)

    src, dst = edge_index[0], edge_index[1]
    a = jnp.zeros((n_relations, n_pad, n_pad), jnp.float32)
    a = a.at[edge_type, dst, src].add(1.0)               # edge counts (exact)
    deg = jnp.sum(a, axis=-1, keepdims=True)              # [R, Np, 1]
    inv_deg = 1.0 / jnp.maximum(deg, 1.0)

    pool01 = (node_graph_id[None, :] ==
              jnp.arange(num_graphs)[:, None]).astype(jnp.float32)   # [B, N]
    counts = jnp.sum(pool01, axis=1, keepdims=True)
    inv_cnt = 1.0 / jnp.maximum(counts, 1.0)
    pool01 = jnp.pad(pool01, ((0, 0), (0, n_pad - n_nodes)))

    x_pad = jnp.pad(x, ((0, n_pad - n_nodes), (0, 0)))
    return (x_pad.astype(jnp.bfloat16), a.astype(jnp.bfloat16),
            inv_deg.astype(jnp.float32), pool01.astype(jnp.bfloat16),
            inv_cnt.astype(jnp.float32))


def init_params(key, embed_dim, graph_hidden, graph_out_dim, n_relations,
                hidden_dim, n_dimensions):
    ks = jax.random.split(key, 8)

    def lin(k, fan_in, fan_out):
        return jax.random.normal(k, (fan_in, fan_out), jnp.float32) / jnp.sqrt(
            jnp.float32(fan_in))

    return dict(
        w_self=lin(ks[0], embed_dim, graph_hidden),
        w_rel=jax.random.normal(ks[1], (n_relations, embed_dim, graph_hidden),
                                jnp.float32) / jnp.sqrt(jnp.float32(embed_dim)),
        b_graph=jnp.zeros((1, graph_hidden), jnp.float32),
        w_gout=lin(ks[2], graph_hidden, graph_out_dim),
        b_gout=0.01 * jax.random.normal(ks[3], (1, graph_out_dim), jnp.float32),
        gamma=jnp.ones((1, graph_out_dim), jnp.float32),
        beta=jnp.zeros((1, graph_out_dim), jnp.float32),
        w1=lin(ks[4], graph_out_dim, hidden_dim),
        b1=0.01 * jax.random.normal(ks[5], (1, hidden_dim), jnp.float32),
        w2=lin(ks[6], hidden_dim, n_dimensions),
        b2=0.01 * jax.random.normal(ks[7], (1, n_dimensions), jnp.float32),
    )


def prepare_params(p):
    """Zero-pad narrow tail dims to 128 lanes (math-exact) and cast matmul
    operands to bf16 (f32 accumulation in-kernel); biases / BN params stay f32.
    """
    gout = p["w_gout"].shape[1]
    hid = p["w1"].shape[1]
    ndim = p["w2"].shape[1]
    gout_p, hid_p, ndim_p = (_round_up(d, LANE) for d in (gout, hid, ndim))

    def pad2(a, rows, cols):
        return jnp.pad(a, ((0, rows - a.shape[0]), (0, cols - a.shape[1])))

    return dict(
        w_self=p["w_self"].astype(jnp.bfloat16),
        w_rel=p["w_rel"].astype(jnp.bfloat16),
        b_graph=p["b_graph"].astype(jnp.float32),
        w_gout=pad2(p["w_gout"], p["w_gout"].shape[0], gout_p).astype(jnp.bfloat16),
        b_gout=pad2(p["b_gout"], 1, gout_p),
        gamma=pad2(p["gamma"], 1, gout_p),
        beta=pad2(p["beta"], 1, gout_p),
        w1=pad2(p["w1"], gout_p, hid_p).astype(jnp.bfloat16),
        b1=pad2(p["b1"], 1, hid_p),
        w2=pad2(p["w2"], hid_p, ndim_p).astype(jnp.bfloat16),
        b2=pad2(p["b2"], 1, ndim_p),
    )


if __name__ == "__main__":
    # Module hyper-parameters (defaults of DialogRater.__init__)
    N_RELATIONS = 9
    EMBED_DIM = 384
    GRAPH_HIDDEN = 384
    GRAPH_OUT_DIM = 10
    N_DIMENSIONS = 4
    HIDDEN_DIM = 50

    # Small synthetic graph batch
    NUM_GRAPHS = 2
    NODES_PER_GRAPH = 16
    EDGES_PER_GRAPH = 32
    N_NODES = NUM_GRAPHS * NODES_PER_GRAPH

    key = jax.random.PRNGKey(0)
    kx, ks, kd, kt, kp = jax.random.split(key, 5)

    # batch.x : node features [N_nodes, embed_dim]
    x = jax.random.normal(kx, (N_NODES, EMBED_DIM), jnp.float32)

    # batch.edge_index / batch.edge_attr : edges restricted to each graph
    src_local = jax.random.randint(ks, (NUM_GRAPHS, EDGES_PER_GRAPH), 0, NODES_PER_GRAPH)
    dst_local = jax.random.randint(kd, (NUM_GRAPHS, EDGES_PER_GRAPH), 0, NODES_PER_GRAPH)
    offsets = (jnp.arange(NUM_GRAPHS) * NODES_PER_GRAPH)[:, None]
    edge_index = jnp.stack([(src_local + offsets).reshape(-1),
                            (dst_local + offsets).reshape(-1)], axis=0)       # [2, E]
    edge_type = jax.random.randint(kt, (NUM_GRAPHS * EDGES_PER_GRAPH,), 0, N_RELATIONS)

    # node -> graph assignment (PyG-style `batch` vector)
    node_graph_id = jnp.repeat(jnp.arange(NUM_GRAPHS), NODES_PER_GRAPH)

    params = prepare_params(
        init_params(kp, EMBED_DIM, GRAPH_HIDDEN, GRAPH_OUT_DIM,
                    N_RELATIONS, HIDDEN_DIM, N_DIMENSIONS))
    x_pad, a_cnt, inv_deg, pool01, inv_cnt = build_graph_operands(
        x, edge_index, edge_type, node_graph_id, NUM_GRAPHS, N_RELATIONS)

    out_padded = dialog_rater(x_pad, a_cnt, inv_deg, pool01, inv_cnt, params)
    out = out_padded[:, :N_DIMENSIONS]          # drop lane padding of the head
    out = jax.block_until_ready(out)
    assert out.shape == (NUM_GRAPHS, N_DIMENSIONS)
    assert bool(jnp.all(jnp.isfinite(out)))
    print("KERNEL_OK")
</pallas_src>

<mosaic_0001>
module attributes {stable_mosaic.version = 11 : i64} {
  func.func @dialog_rater_kernel(%arg0: i32, %arg1: memref<32x384xbf16, #tpu.memory_space<vmem>>, %arg2: memref<1x32x32xbf16, #tpu.memory_space<vmem>>, %arg3: memref<1x32x1xf32, #tpu.memory_space<vmem>>, %arg4: memref<1x384x384xbf16, #tpu.memory_space<vmem>>, %arg5: memref<384x384xbf16, #tpu.memory_space<vmem>>, %arg6: memref<1x384xf32, #tpu.memory_space<vmem>>, %arg7: memref<2x32xbf16, #tpu.memory_space<vmem>>, %arg8: memref<2x1xf32, #tpu.memory_space<vmem>>, %arg9: memref<384x128xbf16, #tpu.memory_space<vmem>>, %arg10: memref<1x128xf32, #tpu.memory_space<vmem>>, %arg11: memref<1x128xf32, #tpu.memory_space<vmem>>, %arg12: memref<1x128xf32, #tpu.memory_space<vmem>>, %arg13: memref<128x128xbf16, #tpu.memory_space<vmem>>, %arg14: memref<1x128xf32, #tpu.memory_space<vmem>>, %arg15: memref<128x128xbf16, #tpu.memory_space<vmem>>, %arg16: memref<1x128xf32, #tpu.memory_space<vmem>>, %arg17: memref<2x128xf32, #tpu.memory_space<vmem>>, %arg18: memref<32x384xf32, #tpu.memory_space<vmem>>) attributes {dimension_semantics = [#tpu.dimension_semantics<arbitrary>], iteration_bounds = array<i64: 9>, scalar_prefetch = 0 : i64, scratch_operands = 1 : i64, tpu.core_type = #tpu.core_type<tc>, window_params = [{pipeline_mode = #tpu.pipeline_mode<synchronous>, transform_indices = @transform_0, window_bounds = array<i64: 32, 384>}, {transform_indices = @transform_1, window_bounds = array<i64: 1, 32, 32>}, {transform_indices = @transform_2, window_bounds = array<i64: 1, 32, 1>}, {transform_indices = @transform_3, window_bounds = array<i64: 1, 384, 384>}, {pipeline_mode = #tpu.pipeline_mode<synchronous>, transform_indices = @transform_4, window_bounds = array<i64: 384, 384>}, {pipeline_mode = #tpu.pipeline_mode<synchronous>, transform_indices = @transform_5, window_bounds = array<i64: 1, 384>}, {pipeline_mode = #tpu.pipeline_mode<synchronous>, transform_indices = @transform_6, window_bounds = array<i64: 2, 32>}, {pipeline_mode = #tpu.pipeline_mode<synchronous>, transform_indices = @transform_7, window_bounds = array<i64: 2, 1>}, {pipeline_mode = #tpu.pipeline_mode<synchronous>, transform_indices = @transform_8, window_bounds = array<i64: 384, 128>}, {pipeline_mode = #tpu.pipeline_mode<synchronous>, transform_indices = @transform_9, window_bounds = array<i64: 1, 128>}, {pipeline_mode = #tpu.pipeline_mode<synchronous>, transform_indices = @transform_10, window_bounds = array<i64: 1, 128>}, {pipeline_mode = #tpu.pipeline_mode<synchronous>, transform_indices = @transform_11, window_bounds = array<i64: 1, 128>}, {pipeline_mode = #tpu.pipeline_mode<synchronous>, transform_indices = @transform_12, window_bounds = array<i64: 128, 128>}, {pipeline_mode = #tpu.pipeline_mode<synchronous>, transform_indices = @transform_13, window_bounds = array<i64: 1, 128>}, {pipeline_mode = #tpu.pipeline_mode<synchronous>, transform_indices = @transform_14, window_bounds = array<i64: 128, 128>}, {pipeline_mode = #tpu.pipeline_mode<synchronous>, transform_indices = @transform_15, window_bounds = array<i64: 1, 128>}, {pipeline_mode = #tpu.pipeline_mode<synchronous>, transform_indices = @transform_16, window_bounds = array<i64: 2, 128>}]} {
    %c0_i32 = arith.constant 0 : i32
    %0 = arith.cmpi eq, %arg0, %c0_i32 : i32
    %1 = arith.extui %0 : i1 to i32
    %c0_i32_0 = arith.constant 0 : i32
    %2 = arith.cmpi ne, %1, %c0_i32_0 : i32
    scf.if %2 {
      %c0_17 = arith.constant 0 : index
      %c0_18 = arith.constant 0 : index
      %21 = vector.load %arg1[%c0_17, %c0_18] : memref<32x384xbf16, #tpu.memory_space<vmem>>, vector<32x384xbf16>
      %c0_19 = arith.constant 0 : index
      %c0_20 = arith.constant 0 : index
      %22 = vector.load %arg5[%c0_19, %c0_20] : memref<384x384xbf16, #tpu.memory_space<vmem>>, vector<384x384xbf16>
      %cst_21 = arith.constant dense<0.000000e+00> : vector<32x384xf32>
      %23 = tpu.matmul %21, %22, %cst_21 {dimension_numbers = #tpu.dot_dimension_numbers<[1], [0], [0], [1], [0, 0, 1, 1], [], []>} : vector<32x384xbf16>, vector<384x384xbf16>, vector<32x384xf32> -> vector<32x384xf32>
      %c0_22 = arith.constant 0 : index
      %c0_23 = arith.constant 0 : index
      %24 = vector.load %arg6[%c0_22, %c0_23] : memref<1x384xf32, #tpu.memory_space<vmem>>, vector<1x384xf32>
      %25 = vector.broadcast %24 : vector<1x384xf32> to vector<32x384xf32>
      %26 = arith.addf %23, %25 : vector<32x384xf32>
      %c0_24 = arith.constant 0 : index
      %c0_25 = arith.constant 0 : index
      %27 = vector.load %arg18[%c0_24, %c0_25] : memref<32x384xf32, #tpu.memory_space<vmem>>, vector<32x384xf32>
      tpu.vector_store %arg18[%c0_24, %c0_25], %26 {strides = array<i32>} : memref<32x384xf32, #tpu.memory_space<vmem>>, vector<32x384xf32>,
    } else {
    }
    %c0 = arith.constant 0 : index
    %c0_1 = arith.constant 0 : index
    %c0_2 = arith.constant 0 : index
    %3 = vector.load %arg2[%c0, %c0_1, %c0_2] : memref<1x32x32xbf16, #tpu.memory_space<vmem>>, vector<1x32x32xbf16>
    %4 = vector.shape_cast %3 : vector<1x32x32xbf16> to vector<32x32xbf16>
    %c0_3 = arith.constant 0 : index
    %c0_4 = arith.constant 0 : index
    %5 = vector.load %arg1[%c0_3, %c0_4] : memref<32x384xbf16, #tpu.memory_space<vmem>>, vector<32x384xbf16>
    %cst = arith.constant dense<0.000000e+00> : vector<32x384xf32>
    %6 = tpu.matmul %4, %5, %cst {dimension_numbers = #tpu.dot_dimension_numbers<[1], [0], [0], [1], [0, 0, 1, 1], [], []>} : vector<32x32xbf16>, vector<32x384xbf16>, vector<32x384xf32> -> vector<32x384xf32>
    %c0_5 = arith.constant 0 : index
    %c0_6 = arith.constant 0 : index
    %c0_7 = arith.constant 0 : index
    %7 = vector.load %arg3[%c0_5, %c0_6, %c0_7] : memref<1x32x1xf32, #tpu.memory_space<vmem>>, vector<1x32x1xf32>
    %8 = vector.shape_cast %7 : vector<1x32x1xf32> to vector<32x1xf32>
    %9 = vector.broadcast %8 : vector<32x1xf32> to vector<32x384xf32>
    %10 = arith.mulf %6, %9 : vector<32x384xf32>
    %11 = arith.truncf %10 : vector<32x384xf32> to vector<32x384xbf16>
    %c0_8 = arith.constant 0 : index
    %c0_9 = arith.constant 0 : index
    %12 = vector.load %arg18[%c0_8, %c0_9] : memref<32x384xf32, #tpu.memory_space<vmem>>, vector<32x384xf32>
    %c0_10 = arith.constant 0 : index
    %c0_11 = arith.constant 0 : index
    %c0_12 = arith.constant 0 : index
    %13 = vector.load %arg4[%c0_10, %c0_11, %c0_12] : memref<1x384x384xbf16, #tpu.memory_space<vmem>>, vector<1x384x384xbf16>
    %14 = vector.shape_cast %13 : vector<1x384x384xbf16> to vector<384x384xbf16>
    %cst_13 = arith.constant dense<0.000000e+00> : vector<32x384xf32>
    %15 = tpu.matmul %11, %14, %cst_13 {dimension_numbers = #tpu.dot_dimension_numbers<[1], [0], [0], [1], [0, 0, 1, 1], [], []>} : vector<32x384xbf16>, vector<384x384xbf16>, vector<32x384xf32> -> vector<32x384xf32>
    %16 = arith.addf %12, %15 : vector<32x384xf32>
    %c0_14 = arith.constant 0 : index
    %c0_15 = arith.constant 0 : index
    %17 = vector.load %arg18[%c0_14, %c0_15] : memref<32x384xf32, #tpu.memory_space<vmem>>, vector<32x384xf32>
    tpu.vector_store %arg18[%c0_14, %c0_15], %16 {strides = array<i32>} : memref<32x384xf32, #tpu.memory_space<vmem>>, vector<32x384xf32>,
    %c8_i32 = arith.constant 8 : i32
    %18 = arith.cmpi eq, %arg0, %c8_i32 : i32
    %19 = arith.extui %18 : i1 to i32
    %c0_i32_16 = arith.constant 0 : i32
    %20 = arith.cmpi ne, %19, %c0_i32_16 : i32
    scf.if %20 {
      %c0_17 = arith.constant 0 : index
      %c0_18 = arith.constant 0 : index
      %21 = vector.load %arg18[%c0_17, %c0_18] : memref<32x384xf32, #tpu.memory_space<vmem>>, vector<32x384xf32>
      %cst_19 = arith.constant 0.000000e+00 : f32
      %22 = vector.broadcast %cst_19 : f32 to vector<32x384xf32>
      %23 = arith.maximumf %21, %22 : vector<32x384xf32>
      %24 = arith.truncf %23 : vector<32x384xf32> to vector<32x384xbf16>
      %c0_20 = arith.constant 0 : index
      %c0_21 = arith.constant 0 : index
      %25 = vector.load %arg7[%c0_20, %c0_21] : memref<2x32xbf16, #tpu.memory_space<vmem>>, vector<2x32xbf16>
      %cst_22 = arith.constant dense<0.000000e+00> : vector<2x384xf32>
      %26 = tpu.matmul %25, %24, %cst_22 {dimension_numbers = #tpu.dot_dimension_numbers<[1], [0], [0], [1], [0, 0, 1, 1], [], []>} : vector<2x32xbf16>, vector<32x384xbf16>, vector<2x384xf32> -> vector<2x384xf32>
      %c0_23 = arith.constant 0 : index
      %c0_24 = arith.constant 0 : index
      %27 = vector.load %arg8[%c0_23, %c0_24] : memref<2x1xf32, #tpu.memory_space<vmem>>, vector<2x1xf32>
      %28 = vector.broadcast %27 : vector<2x1xf32> to vector<2x384xf32>
      %29 = arith.mulf %26, %28 : vector<2x384xf32>
      %30 = arith.truncf %29 : vector<2x384xf32> to vector<2x384xbf16>
      %c0_25 = arith.constant 0 : index
      %c0_26 = arith.constant 0 : index
      %31 = vector.load %arg9[%c0_25, %c0_26] : memref<384x128xbf16, #tpu.memory_space<vmem>>, vector<384x128xbf16>
      %cst_27 = arith.constant dense<0.000000e+00> : vector<2x128xf32>
      %32 = tpu.matmul %30, %31, %cst_27 {dimension_numbers = #tpu.dot_dimension_numbers<[1], [0], [0], [1], [0, 0, 1, 1], [], []>} : vector<2x384xbf16>, vector<384x128xbf16>, vector<2x128xf32> -> vector<2x128xf32>
      %c0_28 = arith.constant 0 : index
      %c0_29 = arith.constant 0 : index
      %33 = vector.load %arg10[%c0_28, %c0_29] : memref<1x128xf32, #tpu.memory_space<vmem>>, vector<1x128xf32>
      %34 = vector.broadcast %33 : vector<1x128xf32> to vector<2x128xf32>
      %35 = arith.addf %32, %34 : vector<2x128xf32>
      %cst_30 = arith.constant dense<0.000000e+00> : vector<128xf32>
      %36 = vector.multi_reduction <add>, %35, %cst_30 [0] : vector<2x128xf32> to vector<128xf32>
      %37 = vector.shape_cast %36 : vector<128xf32> to vector<1x128xf32>
      %cst_31 = arith.constant 2.000000e+00 : f32
      %38 = vector.broadcast %cst_31 : f32 to vector<1x128xf32>
      %39 = arith.divf %37, %38 : vector<1x128xf32>
      %40 = vector.broadcast %39 : vector<1x128xf32> to vector<2x128xf32>
      %41 = arith.subf %35, %40 : vector<2x128xf32>
      %42 = arith.mulf %41, %41 : vector<2x128xf32>
      %cst_32 = arith.constant dense<0.000000e+00> : vector<128xf32>
      %43 = vector.multi_reduction <add>, %42, %cst_32 [0] : vector<2x128xf32> to vector<128xf32>
      %44 = vector.shape_cast %43 : vector<128xf32> to vector<1x128xf32>
      %cst_33 = arith.constant 2.000000e+00 : f32
      %45 = vector.broadcast %cst_33 : f32 to vector<1x128xf32>
      %46 = arith.divf %44, %45 : vector<1x128xf32>
      %47 = vector.broadcast %39 : vector<1x128xf32> to vector<2x128xf32>
      %48 = arith.subf %35, %47 : vector<2x128xf32>
      %cst_34 = arith.constant 9.99999974E-6 : f32
      %49 = vector.broadcast %cst_34 : f32 to vector<1x128xf32>
      %50 = arith.addf %46, %49 : vector<1x128xf32>
      %51 = math.rsqrt %50 : vector<1x128xf32>
      %52 = vector.broadcast %51 : vector<1x128xf32> to vector<2x128xf32>
      %53 = arith.mulf %48, %52 : vector<2x128xf32>
      %c0_35 = arith.constant 0 : index
      %c0_36 = arith.constant 0 : index
      %54 = vector.load %arg11[%c0_35, %c0_36] : memref<1x128xf32, #tpu.memory_space<vmem>>, vector<1x128xf32>
      %55 = vector.broadcast %54 : vector<1x128xf32> to vector<2x128xf32>
      %56 = arith.mulf %53, %55 : vector<2x128xf32>
      %c0_37 = arith.constant 0 : index
      %c0_38 = arith.constant 0 : index
      %57 = vector.load %arg12[%c0_37, %c0_38] : memref<1x128xf32, #tpu.memory_space<vmem>>, vector<1x128xf32>
      %58 = vector.broadcast %57 : vector<1x128xf32> to vector<2x128xf32>
      %59 = arith.addf %56, %58 : vector<2x128xf32>
      %60 = arith.truncf %59 : vector<2x128xf32> to vector<2x128xbf16>
      %c0_39 = arith.constant 0 : index
      %c0_40 = arith.constant 0 : index
      %61 = vector.load %arg13[%c0_39, %c0_40] : memref<128x128xbf16, #tpu.memory_space<vmem>>, vector<128x128xbf16>
      %cst_41 = arith.constant dense<0.000000e+00> : vector<2x128xf32>
      %62 = tpu.matmul %60, %61, %cst_41 {dimension_numbers = #tpu.dot_dimension_numbers<[1], [0], [0], [1], [0, 0, 1, 1], [], []>} : vector<2x128xbf16>, vector<128x128xbf16>, vector<2x128xf32> -> vector<2x128xf32>
      %c0_42 = arith.constant 0 : index
      %c0_43 = arith.constant 0 : index
      %63 = vector.load %arg14[%c0_42, %c0_43] : memref<1x128xf32, #tpu.memory_space<vmem>>, vector<1x128xf32>
      %64 = vector.broadcast %63 : vector<1x128xf32> to vector<2x128xf32>
      %65 = arith.addf %62, %64 : vector<2x128xf32>
      %cst_44 = arith.constant 0.000000e+00 : f32
      %66 = vector.broadcast %cst_44 : f32 to vector<2x128xf32>
      %67 = arith.maximumf %65, %66 : vector<2x128xf32>
      %68 = arith.truncf %67 : vector<2x128xf32> to vector<2x128xbf16>
      %c0_45 = arith.constant 0 : index
      %c0_46 = arith.constant 0 : index
      %69 = vector.load %arg15[%c0_45, %c0_46] : memref<128x128xbf16, #tpu.memory_space<vmem>>, vector<128x128xbf16>
      %cst_47 = arith.constant dense<0.000000e+00> : vector<2x128xf32>
      %70 = tpu.matmul %68, %69, %cst_47 {dimension_numbers = #tpu.dot_dimension_numbers<[1], [0], [0], [1], [0, 0, 1, 1], [], []>} : vector<2x128xbf16>, vector<128x128xbf16>, vector<2x128xf32> -> vector<2x128xf32>
      %c0_48 = arith.constant 0 : index
      %c0_49 = arith.constant 0 : index
      %71 = vector.load %arg16[%c0_48, %c0_49] : memref<1x128xf32, #tpu.memory_space<vmem>>, vector<1x128xf32>
      %72 = vector.broadcast %71 : vector<1x128xf32> to vector<2x128xf32>
      %73 = arith.addf %70, %72 : vector<2x128xf32>
      %c0_50 = arith.constant 0 : index
      %c0_51 = arith.constant 0 : index
      %74 = vector.load %arg17[%c0_50, %c0_51] : memref<2x128xf32, #tpu.memory_space<vmem>>, vector<2x128xf32>
      tpu.vector_store %arg17[%c0_50, %c0_51], %73 {strides = array<i32>} : memref<2x128xf32, #tpu.memory_space<vmem>>, vector<2x128xf32>,
    } else {
    }
    return
  }
  func.func @transform_0(%arg0: i32) -> (i32, i32) {
    %c0_i32 = arith.constant 0 : i32
    %c0_i32_0 = arith.constant 0 : i32
    %c0_i32_1 = arith.constant 0 : i32
    return %c0_i32, %c0_i32_0 : i32, i32
  }
  func.func @transform_1(%arg0: i32) -> (i32, i32, i32) {
    %c0_i32 = arith.constant 0 : i32
    %c0_i32_0 = arith.constant 0 : i32
    %c0_i32_1 = arith.constant 0 : i32
    return %arg0, %c0_i32, %c0_i32_0 : i32, i32, i32
  }
  func.func @transform_2(%arg0: i32) -> (i32, i32, i32) {
    %c0_i32 = arith.constant 0 : i32
    %c0_i32_0 = arith.constant 0 : i32
    %c0_i32_1 = arith.constant 0 : i32
    return %arg0, %c0_i32, %c0_i32_0 : i32, i32, i32
  }
  func.func @transform_3(%arg0: i32) -> (i32, i32, i32) {
    %c0_i32 = arith.constant 0 : i32
    %c0_i32_0 = arith.constant 0 : i32
    %c0_i32_1 = arith.constant 0 : i32
    return %arg0, %c0_i32, %c0_i32_0 : i32, i32, i32
  }
  func.func @transform_4(%arg0: i32) -> (i32, i32) {
    %c0_i32 = arith.constant 0 : i32
    %c0_i32_0 = arith.constant 0 : i32
    %c0_i32_1 = arith.constant 0 : i32
    return %c0_i32, %c0_i32_0 : i32, i32
  }
  func.func @transform_5(%arg0: i32) -> (i32, i32) {
    %c0_i32 = arith.constant 0 : i32
    %c0_i32_0 = arith.constant 0 : i32
    %c0_i32_1 = arith.constant 0 : i32
    return %c0_i32, %c0_i32_0 : i32, i32
  }
  func.func @transform_6(%arg0: i32) -> (i32, i32) {
    %c0_i32 = arith.constant 0 : i32
    %c0_i32_0 = arith.constant 0 : i32
    %c0_i32_1 = arith.constant 0 : i32
    return %c0_i32, %c0_i32_0 : i32, i32
  }
  func.func @transform_7(%arg0: i32) -> (i32, i32) {
    %c0_i32 = arith.constant 0 : i32
    %c0_i32_0 = arith.constant 0 : i32
    %c0_i32_1 = arith.constant 0 : i32
    return %c0_i32, %c0_i32_0 : i32, i32
  }
  func.func @transform_8(%arg0: i32) -> (i32, i32) {
    %c0_i32 = arith.constant 0 : i32
    %c0_i32_0 = arith.constant 0 : i32
    %c0_i32_1 = arith.constant 0 : i32
    return %c0_i32, %c0_i32_0 : i32, i32
  }
  func.func @transform_9(%arg0: i32) -> (i32, i32) {
    %c0_i32 = arith.constant 0 : i32
    %c0_i32_0 = arith.constant 0 : i32
    %c0_i32_1 = arith.constant 0 : i32
    return %c0_i32, %c0_i32_0 : i32, i32
  }
  func.func @transform_10(%arg0: i32) -> (i32, i32) {
    %c0_i32 = arith.constant 0 : i32
    %c0_i32_0 = arith.constant 0 : i32
    %c0_i32_1 = arith.constant 0 : i32
    return %c0_i32, %c0_i32_0 : i32, i32
  }
  func.func @transform_11(%arg0: i32) -> (i32, i32) {
    %c0_i32 = arith.constant 0 : i32
    %c0_i32_0 = arith.constant 0 : i32
    %c0_i32_1 = arith.constant 0 : i32
    return %c0_i32, %c0_i32_0 : i32, i32
  }
  func.func @transform_12(%arg0: i32) -> (i32, i32) {
    %c0_i32 = arith.constant 0 : i32
    %c0_i32_0 = arith.constant 0 : i32
    %c0_i32_1 = arith.constant 0 : i32
    return %c0_i32, %c0_i32_0 : i32, i32
  }
  func.func @transform_13(%arg0: i32) -> (i32, i32) {
    %c0_i32 = arith.constant 0 : i32
    %c0_i32_0 = arith.constant 0 : i32
    %c0_i32_1 = arith.constant 0 : i32
    return %c0_i32, %c0_i32_0 : i32, i32
  }
  func.func @transform_14(%arg0: i32) -> (i32, i32) {
    %c0_i32 = arith.constant 0 : i32
    %c0_i32_0 = arith.constant 0 : i32
    %c0_i32_1 = arith.constant 0 : i32
    return %c0_i32, %c0_i32_0 : i32, i32
  }
  func.func @transform_15(%arg0: i32) -> (i32, i32) {
    %c0_i32 = arith.constant 0 : i32
    %c0_i32_0 = arith.constant 0 : i32
    %c0_i32_1 = arith.constant 0 : i32
    return %c0_i32, %c0_i32_0 : i32, i32
  }
  func.func @transform_16(%arg0: i32) -> (i32, i32) {
    %c0_i32 = arith.constant 0 : i32
    %c0_i32_0 = arith.constant 0 : i32
    %c0_i32_1 = arith.constant 0 : i32
    return %c0_i32, %c0_i32_0 : i32, i32
  }
}

</mosaic_0001>

<bundles_post_ra>
// kernel: tpu_custom_call.1
= control target key start
LH: loop header
LB: loop body
LE: loop exit
PB: predicated region body
PF: predicated region fallthrough
CT: control target
= control target key end

     0   :  { %s5293_s0 = inlined_call_operand.hbm [shape: bf16[32,384], index: 0, kind: input, shape index: {}]   ;;  %s5294_s1 = inlined_call_operand.hbm [shape: bf16[9,32,32], index: 1, kind: input, shape index: {}]   ;;  %s5295_s2 = inlined_call_operand.vmem [shape: f32[9,32,1], index: 2, kind: input, shape index: {}]   ;;  %s5296_s3 = inlined_call_operand.hbm [shape: bf16[9,384,384], index: 3, kind: input, shape index: {}]   ;;  %s5297_s4 = inlined_call_operand.hbm [shape: bf16[384,384], index: 4, kind: input, shape index: {}]   ;;  %s5298_s5 = inlined_call_operand.hbm [shape: f32[1,384], index: 5, kind: input, shape index: {}]   ;;  %s5299_s6 = inlined_call_operand.hbm [shape: bf16[2,32], index: 6, kind: input, shape index: {}]   ;;  %s5300_s7 = inlined_call_operand.vmem [shape: f32[2,1], index: 7, kind: input, shape index: {}]   ;;  %s5301_s8 = inlined_call_operand.hbm [shape: bf16[384,128], index: 8, kind: input, shape index: {}]   ;;  %s5302_s9 = inlined_call_operand.hbm [shape: f32[1,128], index: 9, kind: input, shape index: {}]   ;;  %s5303_s10 = inlined_call_operand.hbm [shape: f32[1,128], index: 10, kind: input, shape index: {}]   ;;  %s5304_s11 = inlined_call_operand.hbm [shape: f32[1,128], index: 11, kind: input, shape index: {}]   ;;  %s5305_s12 = inlined_call_operand.hbm [shape: bf16[128,128], index: 12, kind: input, shape index: {}]   ;;  %s5306_s13 = inlined_call_operand.hbm [shape: f32[1,128], index: 13, kind: input, shape index: {}]   ;;  %s5307_s14 = inlined_call_operand.hbm [shape: bf16[128,128], index: 14, kind: input, shape index: {}]   ;;  %s5308_s15 = inlined_call_operand.hbm [shape: f32[1,128], index: 15, kind: input, shape index: {}]   ;;  %s5309_s16 = inlined_call_operand.hbm [shape: f32[2,128], index: 16, kind: output, shape index: {}]  }
   0x1   :  { %5327 = sst [smem:[#allocation37_spill]] %s5293_s0 }
   0x2   :  { %5328 = sst [smem:[#allocation38_spill]] %s5294_s1 }
   0x3   :  { %5329 = sst [smem:[#allocation39_spill]] %s5295_s2 }
   0x4   :  { %5330 = sst [smem:[#allocation40_spill]] %s5297_s4 }
   0x5   :  { %5331 = sst [smem:[#allocation41_spill]] %s5298_s5 }
   0x6   :  { %5332 = sst [smem:[#allocation42_spill]] %s5299_s6 }
   0x7   :  { %5333 = sst [smem:[#allocation43_spill]] %s5300_s7 }
   0x8   :  { %5334 = sst [smem:[#allocation44_spill]] %s5302_s9 }
   0x9   :  { %5335 = sst [smem:[#allocation45_spill]] %s5304_s11 }
   0xa   :  { %5336 = sst [smem:[#allocation46_spill]] %s5306_s13 }
   0xb   :  { %5337 = sst [smem:[#allocation47_spill]] %s5309_s16 }
   0xc   :  { %21 = vsyncpa [#allocation4], 0 }
   0xd   :  { %22 = vsyncpa [#allocation7], 0 }
   0xe   :  { %24 = vsyncpa [#allocation7 + $0x1], 0 }
   0xf   :  { %25 = vsyncpa [#allocation10], 0 }
  0x10   :  { %26 = vsyncpa [#allocation13], 0 }
  0x11   :  { %27 = vsyncpa [#allocation16], 0 }
  0x12   :  { %28 = vsyncpa [#allocation19], 0 }
  0x13   :  { %29 = vsyncpa [#allocation22], 0 }
  0x14   :  { %30 = vsyncpa [#allocation25], 0 }
  0x15   :  { %31 = vsyncpa [#allocation5], 0  ;;  %s4818_s21 = smov 0   ;;  %s4820_s22 = smov 0  }
  0x16   :  { %s4822_s23 = smov 0   ;;  %s4824_s24 = smov 0  }
  0x17 LB: > { %s4839_s25 = sadd.s32 4294967295, %s4707_s24   ;;  %p3311_p0 = scmp.ge.s32.totalorder %s4707_s24, 1  ;;  %s4707_s24 = sphi %s4824_s24, %s5385_s24   ;;  %s4703_s23 = sphi %s4822_s23, %s5384_s23   ;;  %s4699_s22 = sphi %s4820_s22, %s5383_s22   ;;  %s4695_s21 = sphi %s4818_s21, %s5382_s21  }
  0x18   : > { %p5313_p1 = scmp.eq.s32.totalorder %s4839_s25, 0  ;;  %p414_p2 = scmp.lt.s32.totalorder %s4707_s24, 10 }
  0x19   : > { %s4709_s27 = smov [#allocation9]   ;;  %s4710_s29 = smov [#allocation12]  }
  0x1a   : > { %p4845_p4 = pnand %p3311_p0, %p414_p2  ;;  %s439_s28 = sshll.u32 %s4709_s27, 4  ;;  %s440_s28 = int_to_ptr.vmem [resolvable:$true] %s439_s28 }
  0x1b   : > { %s464_s30 = sshll.u32 %s4710_s29, 4  ;;  %s4711_s17 = smov [#allocation15]   ;;  %s465_s30 = int_to_ptr.vmem [resolvable:$true] %s464_s30 }
  0x1c   : > { %s5338_s26 = scalar_select %p4845_p4, 1, 0 }
  0x1d   : > { %p3869_p5 = pneg %p4845_p4  ;;  %s491_s18 = sshll.u32 %s4711_s17, 4  ;;  %s4857_s18 = int_to_ptr.vmem [resolvable:$true] %s491_s18 }
  0x1e   : > { %5339 = sst [smem:[#allocation36_spill]] %s5338_s26  ;;  %s4260_s20 = scalar_lea.vmem %s440_s28, 9216 }
  0x1f   : > { %p4853_p6 = pnand %p3869_p5, %p5313_p1  ;;  %p4261_p8 = scmp.ne.s32.totalorder %s440_s28, %s4260_s20 }
  0x20   : > { %p4268_p11 = scmp.lt.s32.totalorder %s440_s28, %s440_s28  ;;  %p4269_p12 = scmp.lt.s32.totalorder %s4260_s20, %s4260_s20 }
  0x21   : > { %s5340_s0 = scalar_select %p4853_p6, 1, 0 }
  0x22   : > { %p4861_p7 = pneg %p4853_p6  ;;  %p4270_p13 = por %p4269_p12, %p4268_p11 }
  0x24   : > { %p4263_p9 = pnand %p4261_p8, %p4861_p7 }
  0x26   : > { %p4264_p10 = pneg %p4263_p9 }
  0x28   : > { %p4271_p0 = pnand %p4270_p13, %p4264_p10 }
  0x2a   : > { %4274 = shalt.err (!%p4271_p0)
}
  0x2b   : > { %s5311_s27 = smov 192   ;;  %s5314_s29 = smov 12  }
  0x2c   : > { %s5342_s4 = sld [smem:[#allocation40_spill]]  ;;  %s4286_s7 = scalar_lea.vmem %s465_s30, 16 }
  0x2d   : > { %p4287_p2 = scmp.ne.s32.totalorder %s465_s30, %s4286_s7  ;;  %s4293_s20 = scalar_lea.vmem %s465_s30, 32 }
  0x2e   : > { %p4294_p9 = scmp.lt.s32.totalorder %s465_s30, %s465_s30  ;;  %p4295_p10 = scmp.lt.s32.totalorder %s4293_s20, %s4286_s7 }
  0x2f   : > { %p4289_p5 = pnand %p4287_p2, %p4861_p7 }
  0x30   : > { %p4296_p11 = por %p4295_p10, %p4294_p9 }
  0x31   : > { %p4290_p8 = pneg %p4289_p5 }
  0x32   : > { %3875 = dma.hbm_to_vmem [thread:$0]  (!%p4853_p6), %s5342_s4, 9216, %s440_s28, [#allocation10], %s5311_s27, %s5311_s27, %s5314_s29  }
  0x33   : > { %p4297_p12 = pnand %p4296_p11, %p4290_p8 }
  0x35   : > { %4300 = shalt.err (!%p4297_p12)
}
  0x36   : > { %s5343_s6 = sld [smem:[#allocation42_spill]]  ;;  %s4312_s16 = scalar_lea.vmem %s4857_s18, 16 }
  0x37   : > { %p4313_p13 = scmp.ne.s32.totalorder %s4857_s18, %s4312_s16  ;;  %s4319_s7 = scalar_lea.vmem %s4857_s18, 32 }
  0x38   : > { %p4320_p5 = scmp.lt.s32.totalorder %s4857_s18, %s4857_s18  ;;  %p4321_p8 = scmp.lt.s32.totalorder %s4319_s7, %s4312_s16 }
  0x39   : > { %p4315_p0 = pnand %p4313_p13, %p4861_p7 }
  0x3a   : > { %p4322_p9 = por %p4321_p8, %p4320_p5 }
  0x3b   : > { %p4316_p2 = pneg %p4315_p0 }
  0x3c   : > { %3881 = dma.hbm_to_vmem [thread:$0]  (!%p4853_p6), %s5343_s6, 16, %s465_s30, [#allocation13]  }
  0x3d   : > { %p4323_p10 = pnand %p4322_p9, %p4316_p2 }
  0x3f   : > { %4326 = shalt.err (!%p4323_p10)
}
  0x40   : > { %s5344_s9 = sld [smem:[#allocation44_spill]]  ;;  %s4714_s28 = smov [#allocation18]  }
  0x41   : > { %s513_s30 = sshll.u32 %s4714_s28, 4  ;;  %s4715_s17 = smov [#allocation21]   ;;  %s514_s30 = int_to_ptr.vmem [resolvable:$true] %s513_s30 }
  0x42   : > { %s537_s20 = sshll.u32 %s4715_s17, 4  ;;  %s4338_s27 = scalar_lea.vmem %s514_s30, 16  ;;  %s538_s20 = int_to_ptr.vmem [resolvable:$true] %s537_s20 }
  0x43   : > { %p4339_p11 = scmp.ne.s32.totalorder %s514_s30, %s4338_s27  ;;  %s4345_s16 = scalar_lea.vmem %s514_s30, 32 }
  0x44   : > { %p4346_p0 = scmp.lt.s32.totalorder %s514_s30, %s514_s30  ;;  %p4347_p2 = scmp.lt.s32.totalorder %s4345_s16, %s4338_s27 }
  0x45   : > { %p4341_p12 = pnand %p4339_p11, %p4861_p7 }
  0x46   : > { %3887 = dma.hbm_to_vmem [thread:$0]  (!%p4853_p6), %s5344_s9, 16, %s4857_s18, [#allocation16]  }
  0x47   : > { %p4342_p13 = pneg %p4341_p12  ;;  %p4348_p5 = por %p4347_p2, %p4346_p0 }
  0x49   : > { %p4349_p8 = pnand %p4348_p5, %p4342_p13 }
  0x4b   : > { %4352 = shalt.err (!%p4349_p8)
}
  0x4c   : > { %s5345_s11 = sld [smem:[#allocation45_spill]]  ;;  %s4364_s2 = scalar_lea.vmem %s538_s20, 16 }
  0x4d   : > { %p4365_p9 = scmp.ne.s32.totalorder %s538_s20, %s4364_s2  ;;  %s4371_s26 = scalar_lea.vmem %s538_s20, 32 }
  0x4e   : > { %p4372_p12 = scmp.lt.s32.totalorder %s538_s20, %s538_s20  ;;  %p4373_p3 = scmp.lt.s32.totalorder %s4371_s26, %s4364_s2 }
  0x4f   : > { %p4367_p10 = pnand %p4365_p9, %p4861_p7 }
  0x50   : > { %p4374_p1 = por %p4373_p3, %p4372_p12 }
  0x51   : > { %p4368_p11 = pneg %p4367_p10 }
  0x52   : > { %3893 = dma.hbm_to_vmem [thread:$0]  (!%p4853_p6), %s5345_s11, 16, %s514_s30, [#allocation19]  }
  0x53   : > { %p4375_p0 = pnand %p4374_p1, %p4368_p11 }
  0x55   : > { %4378 = shalt.err (!%p4375_p0)
}
  0x56   : > { %s5346_s13 = sld [smem:[#allocation46_spill]]  ;;  %s4910_s30 = sadd.s32 1, %s4707_s24  }
  0x57   : > { %s62_s17 = ssub.s32 %s4707_s24, %s4910_s30  ;;  %s65_s16 = sadd.s32 1, %s4703_s23 }
  0x58   : > { %p63_p1 = scmp.eq.s32.totalorder %s62_s17, 0  ;;  %p72_p3 = scmp.ne.s32.totalorder %s4703_s23, %s4699_s22 }
  0x59   : > { %p73_p13 = scmp.eq.s32.totalorder %s4707_s24, 0  ;;  %p78_p2 = scmp.ne.s32.totalorder %s4699_s22, %s4695_s21 }
  0x5a   : > { %s4921_s7 = scalar_select %p63_p1, %s4703_s23, %s65_s16  }
  0x5b   : > { %p74_p5 = por %p73_p13, %p72_p3  ;;  %p5347_p8 = scmp.eq.s32.totalorder %s4839_s25, 0 }
  0x5c   : > { %3899 = dma.hbm_to_vmem [thread:$0]  (!%p4853_p6), %s5346_s13, 16, %s538_s20, [#allocation22]  }
  0x5d   : > { %p4925_p9 = por %p5347_p8, %p78_p2  ;;  %p3925_p10 = scmp.lt.s32.totalorder %s4707_s24, 9 }
  0x5e   : > { %s572_s2 = sand.u32 1, %s4707_s24   ;;  %s574_s20 = sand.u32 1, %s4703_s23  }
  0x5f   : > { %s5348_s18 = scalar_select %p4925_p9, 1, 0 }
  0x60   : > { %s3325_s26 = sshll.u32 %s574_s20, 4  ;;  %s3560_s27 = sshll.u32 %s4707_s24, 8 }
  0x61   : > { %s5349_s1 = sld [smem:[#allocation38_spill]]  ;;  %s576_s21 = scalar_lea.vmem [#allocation6], %s3325_s26 }
  0x62   : > { %s583_s16 = sshll.u32 %s576_s21, 4  ;;  %p4938_p11 = pnand %p3925_p10, %p74_p5  ;;  %s4942_s16 = int_to_ptr.vmem [resolvable:$true] %s583_s16 }
  0x63   : > { %s4944_s6 = smul.u32 576, %s574_s20  ;;  %s4946_s9 = scalar_lea.sflag [#allocation7], %s572_s2 }
  0x64   : > { %s5350_s4 = scalar_select %p4938_p11, 1, 0 }
  0x65   : > { %p5324_p0 = pneg %p4938_p11 }
  0x67   : > { %s4936_s17 = scalar_lea.hbm %s5349_s1, %s3560_s27  ;;  %s4384_s28 = scalar_lea.hbm %s5349_s1, 2304 }
  0x68   : > { %s4379_s29 = scalar_lea.hbm %s4936_s17, 256  ;;  %p4385_p13 = scmp.lt.s32.totalorder %s4936_s17, %s5349_s1 }
  0x69   : > { %p4380_p12 = scmp.ne.s32.totalorder %s4936_s17, %s4379_s29  ;;  %p4386_p2 = scmp.lt.s32.totalorder %s4384_s28, %s4379_s29 }
  0x6b   : > { %p4382_p1 = pnand %p5324_p0, %p4380_p12  ;;  %p4387_p5 = por %p4386_p2, %p4385_p13 }
  0x6d   : > { %p4383_p3 = pneg %p4382_p1 }
  0x6f   : > { %p4388_p8 = pnand %p4387_p5, %p4383_p3 }
  0x71   : > { %4391 = shalt.err (!%p4388_p8)
}
  0x72   : > { %s4392_s2 = scalar_lea.vmem %s4942_s16, 256  ;;  %s4716_s20 = smov [#allocation6]  }
  0x73   : > { %p4393_p10 = scmp.ne.s32.totalorder %s4942_s16, %s4392_s2  ;;  %s4397_s26 = sshll.u32 %s4716_s20, 4  ;;  %s4398_s26 = int_to_ptr.vmem [resolvable:$false] %s4397_s26 }
  0x74   : > { %s4399_s27 = scalar_lea.vmem %s4398_s26, 512  ;;  %p4400_p9 = scmp.lt.s32.totalorder %s4942_s16, %s4398_s26 }
  0x75   : > { %p4395_p12 = pnand %p4393_p10, %p5324_p0  ;;  %p4401_p4 = scmp.lt.s32.totalorder %s4399_s27, %s4392_s2 }
  0x77   : > { %p4396_p1 = pneg %p4395_p12  ;;  %p4402_p6 = por %p4401_p4, %p4400_p9 }
  0x79   : > { %p4403_p13 = pnand %p4402_p6, %p4396_p1 }
  0x7b   : > { %4406 = shalt.err (!%p4403_p13)
}
  0x7c   : > { %s5320_s11 = smov 64   ;;  %s5322_s29 = smov 4  }
  0x7d   : > { %3909 = dma.hbm_to_vmem [thread:$0]  (!%p4938_p11), %s4936_s17, 256, %s4942_s16, %s4946_s9, %s5320_s11, %s5320_s11, %s5322_s29  }
  0x7e   : > { %s4719_s28 = smov [#allocation3]  }
  0x7f   : > { %s426_s21 = sshll.u32 %s4719_s28, 4  ;;  %s427_s21 = int_to_ptr.vmem [resolvable:$true] %s426_s21 }
  0x80   : > { %s4418_s20 = scalar_lea.vmem %s427_s21, 768  ;;  %p4426_p9 = scmp.lt.s32.totalorder %s427_s21, %s427_s21 }
  0x81   : > { %p4419_p3 = scmp.ne.s32.totalorder %s427_s21, %s4418_s20  ;;  %p4427_p2 = scmp.lt.s32.totalorder %s4418_s20, %s4418_s20 }
  0x83   : > { %p4421_p4 = pnand %p4419_p3, %p4861_p7  ;;  %p4428_p5 = por %p4427_p2, %p4426_p9 }
  0x85   : > { %p4422_p6 = pneg %p4421_p4 }
  0x87   : > { %p4429_p8 = pnand %p4428_p5, %p4422_p6 }
  0x89   : > { %4432 = shalt.err (!%p4429_p8)
}
  0x8a   : > { %p5351_p10 = scmp.ne.s32.totalorder %s5340_s0, 0  ;;  %s5352_s2 = smov 12  }
  0x8b   : > { %s5353_s26 = smov 192   ;;  %s5354_s16 = sld [smem:[#allocation37_spill]] }
  0x8c   : > { %s4720_s28 = smov [#allocation11]   ;;  %s4721_s29 = smov [#allocation14]  }
  0x8d   : > { %s453_s11 = sshll.u32 %s4720_s28, 4  ;;  %s477_s1 = sshll.u32 %s4721_s29, 4  ;;  %s454_s11 = int_to_ptr.vmem [resolvable:$true] %s453_s11  ;;  %s478_s1 = int_to_ptr.vmem [resolvable:$true] %s477_s1 }
  0x8e   : > { %s4444_s13 = scalar_lea.vmem %s454_s11, 48  ;;  %s4451_s20 = scalar_lea.vmem %s454_s11, 64 }
  0x8f   : > { %p4445_p12 = scmp.ne.s32.totalorder %s454_s11, %s4444_s13  ;;  %p4452_p3 = scmp.lt.s32.totalorder %s454_s11, %s454_s11 }
  0x90   : > { %p4453_p4 = scmp.lt.s32.totalorder %s4451_s20, %s4444_s13 }
  0x91   : > { %3872 = dma.hbm_to_vmem [thread:$0]  (!%p5351_p10), %s5354_s16, 768, %s427_s21, [#allocation4], %s5353_s26, %s5353_s26, %s5352_s2  }
  0x92   : > { %p4447_p1 = pnand %p4445_p12, %p4861_p7  ;;  %p4454_p6 = por %p4453_p4, %p4452_p3 }
  0x94   : > { %p4448_p13 = pneg %p4447_p1 }
  0x96   : > { %p4455_p9 = pnand %p4454_p6, %p4448_p13 }
  0x98   : > { %4458 = shalt.err (!%p4455_p9)
}
  0x99   : > { %s5355_s5 = sld [smem:[#allocation41_spill]]  ;;  %s4470_s29 = scalar_lea.vmem %s478_s1, 3072 }
  0x9a   : > { %p4471_p2 = scmp.ne.s32.totalorder %s478_s1, %s4470_s29  ;;  %p4478_p12 = scmp.lt.s32.totalorder %s478_s1, %s478_s1 }
  0x9b   : > { %p4479_p1 = scmp.lt.s32.totalorder %s4470_s29, %s4470_s29 }
  0x9c   : > { %p4473_p5 = pnand %p4471_p2, %p4861_p7 }
  0x9d   : > { %p4480_p0 = por %p4479_p1, %p4478_p12 }
  0x9e   : > { %p4474_p8 = pneg %p4473_p5 }
  0x9f   : > { %3878 = dma.hbm_to_vmem [thread:$0]  (!%p5351_p10), %s5355_s5, 48, %s454_s11, [#allocation10]  }
  0xa0   : > { %p4481_p11 = pnand %p4480_p0, %p4474_p8 }
  0xa2   : > { %4484 = shalt.err (!%p4481_p11)
}
  0xa3   : > { %s5356_s13 = smov 4   ;;  %s5357_s17 = smov 64  }
  0xa4   : > { %3884 = dma.hbm_to_vmem [thread:$0]  (!%p5351_p10), %s5301_s8, 3072, %s478_s1, [#allocation13], %s5357_s17, %s5357_s17, %s5356_s13  }
  0xa5   : > { %s4722_s11 = smov [#allocation17]   ;;  %s4723_s27 = smov [#allocation20]  }
  0xa6   : > { %s502_s20 = sshll.u32 %s4722_s11, 4  ;;  %s523_s21 = sshll.u32 %s4723_s27, 4  ;;  %s503_s20 = int_to_ptr.vmem [resolvable:$true] %s502_s20  ;;  %s524_s21 = int_to_ptr.vmem [resolvable:$true] %s523_s21 }
  0xa7   : > { %s4496_s5 = scalar_lea.vmem %s503_s20, 16  ;;  %s4503_s29 = scalar_lea.vmem %s503_s20, 32 }
  0xa8   : > { %p4497_p13 = scmp.ne.s32.totalorder %s503_s20, %s4496_s5  ;;  %p4504_p3 = scmp.lt.s32.totalorder %s503_s20, %s503_s20 }
  0xa9   : > { %p4505_p4 = scmp.lt.s32.totalorder %s4503_s29, %s4496_s5 }
  0xaa   : > { %p4499_p0 = pnand %p4497_p13, %p4861_p7 }
  0xab   : > { %p4506_p6 = por %p4505_p4, %p4504_p3 }
  0xac   : > { %p4500_p11 = pneg %p4499_p0 }
  0xae   : > { %p4507_p9 = pnand %p4506_p6, %p4500_p11 }
  0xb0   : > { %4510 = shalt.err (!%p4507_p9)
}
  0xb1   : > { %3890 = dma.hbm_to_vmem [thread:$0]  (!%p5351_p10), %s5303_s10, 16, %s503_s20, [#allocation16]  }
  0xb2   : > { %s4522_s28 = scalar_lea.vmem %s524_s21, 1024  ;;  %p4530_p12 = scmp.lt.s32.totalorder %s524_s21, %s524_s21 }
  0xb3   : > { %p4523_p2 = scmp.ne.s32.totalorder %s524_s21, %s4522_s28  ;;  %p4531_p1 = scmp.lt.s32.totalorder %s4522_s28, %s4522_s28 }
  0xb5   : > { %p4525_p5 = pnand %p4523_p2, %p4861_p7  ;;  %p4532_p13 = por %p4531_p1, %p4530_p12 }
  0xb7   : > { %p4526_p8 = pneg %p4525_p5 }
  0xb9   : > { %p4533_p0 = pnand %p4532_p13, %p4526_p8 }
  0xbb   : > { %4536 = shalt.err (!%p4533_p0)
}
  0xbc   : > { %3896 = dma.hbm_to_vmem [thread:$0]  (!%p5351_p10), %s5305_s12, 1024, %s524_s21, [#allocation19], %s5357_s17, %s5357_s17, %s5356_s13  }
  0xbd   : > { %s4724_s20 = smov [#allocation23]   ;;  %s4725_s29 = smov [#allocation24]  }
  0xbe   : > { %s547_s27 = sshll.u32 %s4724_s20, 4  ;;  %s561_s16 = sshll.u32 %s4725_s29, 4  ;;  %s548_s27 = int_to_ptr.vmem [resolvable:$true] %s547_s27  ;;  %s562_s16 = int_to_ptr.vmem [resolvable:$true] %s561_s16 }
  0xbf   : > { %s4548_s1 = scalar_lea.vmem %s548_s27, 1024  ;;  %p4556_p6 = scmp.lt.s32.totalorder %s548_s27, %s548_s27 }
  0xc0   : > { %p4549_p11 = scmp.ne.s32.totalorder %s548_s27, %s4548_s1  ;;  %p4557_p9 = scmp.lt.s32.totalorder %s4548_s1, %s4548_s1 }
  0xc2   : > { %p4551_p3 = pnand %p4549_p11, %p4861_p7  ;;  %p4558_p2 = por %p4557_p9, %p4556_p6 }
  0xc4   : > { %p4552_p4 = pneg %p4551_p3 }
  0xc6   : > { %p4559_p5 = pnand %p4558_p2, %p4552_p4 }
  0xc8   : > { %4562 = shalt.err (!%p4559_p5)
}
  0xc9   : > { %3902 = dma.hbm_to_vmem [thread:$0]  (!%p5351_p10), %s5307_s14, 1024, %s548_s27, [#allocation22], %s5357_s17, %s5357_s17, %s5356_s13  }
  0xca   : > { %s3811_s5 = smul.u32 9216, %s4707_s24  ;;  %s4574_s11 = scalar_lea.vmem %s562_s16, 16 }
  0xcb   : > { %p4575_p8 = scmp.ne.s32.totalorder %s562_s16, %s4574_s11  ;;  %s4581_s20 = scalar_lea.vmem %s562_s16, 32 }
  0xcc   : > { %p4582_p13 = scmp.lt.s32.totalorder %s562_s16, %s562_s16  ;;  %p4583_p0 = scmp.lt.s32.totalorder %s4581_s20, %s4574_s11 }
  0xcd   : > { %p4577_p12 = pnand %p4575_p8, %p4861_p7 }
  0xce   : > { %p4584_p11 = por %p4583_p0, %p4582_p13 }
  0xcf   : > { %p4578_p1 = pneg %p4577_p12 }
  0xd1   : > { %p4585_p3 = pnand %p4584_p11, %p4578_p1 }
  0xd3   : > { %4588 = shalt.err (!%p4585_p3)
}
  0xd4   : > { %3905 = dma.hbm_to_vmem [thread:$0]  (!%p5351_p10), %s5308_s15, 16, %s562_s16, [#allocation25]  }
  0xd5   : > { %s5041_s19 = scalar_lea.hbm %s5296_s3, %s3811_s5  ;;  %s605_s17 = scalar_lea.vmem [#allocation8], %s4944_s6 }
  0xd6   : > { %s612_s27 = sshll.u32 %s605_s17, 4  ;;  %s4589_s21 = scalar_lea.hbm %s5041_s19, 9216  ;;  %s613_s27 = int_to_ptr.vmem [resolvable:$true] %s612_s27 }
  0xd7   : > { %p4590_p7 = scmp.ne.s32.totalorder %s5041_s19, %s4589_s21  ;;  %p5358_p4 = scmp.ne.s32.totalorder %s5350_s4, 0 }
  0xd8   : > { %s4594_s16 = scalar_lea.hbm %s5296_s3, 82944  ;;  %p4595_p10 = scmp.lt.s32.totalorder %s5041_s19, %s5296_s3 }
  0xd9   : > { %p5359_p6 = pneg %p5358_p4  ;;  %p4596_p5 = scmp.lt.s32.totalorder %s4594_s16, %s4589_s21 }
  0xdb   : > { %p4592_p9 = pnand %p4590_p7, %p5359_p6  ;;  %p4597_p8 = por %p4596_p5, %p4595_p10 }
  0xdd   : > { %p4593_p2 = pneg %p4592_p9 }
  0xdf   : > { %p4598_p12 = pnand %p4597_p8, %p4593_p2 }
  0xe1   : > { %4601 = shalt.err (!%p4598_p12)
}
  0xe2   : > { %s4602_s6 = scalar_lea.vmem %s613_s27, 9216  ;;  %p5360_p13 = pmov %p5359_p6 }
  0xe3   : > { %p4603_p1 = scmp.ne.s32.totalorder %s613_s27, %s4602_s6  ;;  %s4726_s5 = smov [#allocation8]  }
  0xe4   : > { %s4607_s29 = sshll.u32 %s4726_s5, 4  ;;  %s4608_s29 = int_to_ptr.vmem [resolvable:$false] %s4607_s29 }
  0xe5   : > { %p4605_p0 = pnand %p4603_p1, %p5360_p13  ;;  %s4609_s1 = scalar_lea.vmem %s4608_s29, 18432 }
  0xe6   : > { %p4610_p3 = scmp.lt.s32.totalorder %s613_s27, %s4608_s29  ;;  %p4611_p7 = scmp.lt.s32.totalorder %s4609_s1, %s4602_s6 }
  0xe7   : > { %p4606_p11 = pneg %p4605_p0 }
  0xe8   : > { %p4612_p6 = por %p4611_p7, %p4610_p3 }
  0xea   : > { %p4613_p9 = pnand %p4612_p6, %p4606_p11 }
  0xec   : > { %4616 = shalt.err (!%p4613_p9)
}
  0xed   : > { %3912 = dma.hbm_to_vmem [thread:$0]  (!%p5358_p4), %s5041_s19, 9216, %s613_s27, %s4946_s9, %s5353_s26, %s5353_s26, %s5352_s2  }
  0xee   : > { %s5361_s24 = sld [smem:[#allocation36_spill]] }
  0xf4   : > { %p5362_p2 = scmp.ne.s32.totalorder %s5361_s24, 0 }
  0xf5   : > { %p5363_p10 = scmp.eq.s32.totalorder (!%p5362_p2), %s4839_s25, 0 }
  0xf6   : > { %624 = sbr.rel (%p5362_p2) target bundleno = 1949 (0x79d), region = 84 }
  0xfb   : > { %4658 = dma.done.wait (%p5363_p10), [#allocation4], 768   ;;  %p5364_p5 = pmov %p5363_p10 }
  0xfc   : > { %s630_s13 = sand.u32 1, %s4839_s25   ;;  %s632_s4 = sand.u32 1, %s4699_s22  }
  0xfd   : > { %4660 = vsyncadd (%p5364_p5), [#allocation4], 4294966528  ;;  %s5074_s17 = sshll.u32 %s632_s4, 4  ;;  %s631_s21 = scalar_lea.sflag [#allocation7], %s630_s13 }
  0xfe   : > { %s634_s0 = scalar_lea.vmem [#allocation6], %s5074_s17  ;;  %p5365_p4 = scmp.ne.s32.totalorder %s5348_s18, 0 }
 0x100   : > { %4662 = dma.done.wait (%p5365_p4), %s631_s21, 9472  }
 0x101   : > { %4664 = vsyncadd (%p5365_p4), %s631_s21, 4294957824  ;;  %s3812_s9 = smul.u32 576, %s632_s4  ;;  %p5366_p8 = pmov %p5364_p5 }
 0x103   : > { %s5081_s2 = scalar_lea.vmem [#allocation8], %s3812_s9 }
 0x104   : > { %4666 = dma.done.wait (%p5366_p8), [#allocation10], 9264   ;;  %p5367_p12 = pmov %p5364_p5 }
 0x105   : > { %p5368_p1 = pmov %p5364_p5 }
 0x106   : > { %4668 = vsyncadd (%p5367_p12), [#allocation10], 4294958032 }
 0x107   : > { %4670 = dma.done.wait (%p5368_p1), [#allocation13], 3088   ;;  %p5369_p13 = pmov %p5368_p1 }
 0x108   : > { %p5370_p0 = pmov %p5368_p1 }
 0x109   : > { %4672 = vsyncadd (%p5369_p13), [#allocation13], 4294964208 }
 0x10a   : > { %4674 = dma.done.wait (%p5370_p0), [#allocation16], 32   ;;  %p5371_p11 = pmov %p5370_p0 }
 0x10b   : > { %p5372_p3 = pmov %p5370_p0 }
 0x10c   : > { %4676 = vsyncadd (%p5371_p11), [#allocation16], 4294967264 }
 0x10d   : > { %4678 = dma.done.wait (%p5372_p3), [#allocation19], 1040   ;;  %p5373_p7 = pmov %p5370_p0 }
 0x10e   : > { %p5374_p6 = pmov %p5370_p0 }
 0x10f   : > { %4680 = vsyncadd (%p5373_p7), [#allocation19], 4294966256 }
 0x110   : > { %4682 = dma.done.wait (%p5374_p6), [#allocation22], 1040   ;;  %p5375_p9 = pmov %p5370_p0 }
 0x111   : > { %p5376_p2 = pmov %p5370_p0 }
 0x112   : > { %4684 = vsyncadd (%p5375_p9), [#allocation22], 4294966256 }
 0x113   : > { %4686 = dma.done.wait (%p5376_p2), [#allocation25], 16   ;;  %p5377_p10 = pmov %p5370_p0 }
 0x114   : > { %p741_p5 = scmp.lt.s32.totalorder %s4839_s25, 8  ;;  %s5378_s28 = sld [smem:[#allocation39_spill]] }
 0x115   : > { %4688 = vsyncadd (%p5377_p10), [#allocation25], 4294967280  ;;  %p5379_p4 = scmp.ne.s32.totalorder %s4839_s25, 0 }
 0x116   : > { %s742_s18 = scalar_select %p741_p5, %s4839_s25, 8 }
 0x117   : > { %750 = sbr.rel (%p5379_p4) target bundleno = 583 (0x247), region = 144 }
 0x118   : > { %s3561_s26 = sshll.u32 %s742_s18, 5 }
 0x11a   : > { %s5112_s16 = scalar_lea.vmem %s5378_s28, %s3561_s26 }
 0x11c   : > { %v3994_v0 = vld [vmem:[#allocation9 + $0xac] ss:$12 sps:$4 sm:$0xff]   ;;  %v3996_v1 = vld [vmem:[#allocation9 + $0xa8] ss:$12 sps:$4 sm:$0xff]   ;;  %v4727_v2 = vmov 0  }
 0x11d   : > { %1373 = vmatprep.mubr.bf16.mxu1 %v4727_v2  ;;  %1288 = vmatprep.subr.bf16.mxu0 %v3994_v0  ;;  %v3997_v3 = vld [vmem:[#allocation9 + $0x94] ss:$12 sps:$4 sm:$0xff]   ;;  %v3999_v4 = vld [vmem:[#allocation9 + $0x90] ss:$12 sps:$4 sm:$0xff]   ;;  %v4006_v6 = vld [vmem:[#allocation9 + $0x22c] ss:$12 sps:$4 sm:$0xff]  }
 0x11e   : > { %1289 = vmatpush1.bf16.msra.mxu0 %v3996_v1  ;;  %v4000_v5 = vld [vmem:[#allocation9 + $0x7c] ss:$12 sps:$4 sm:$0xff]   ;;  %v4002_v8 = vld [vmem:[#allocation9 + $0x78] ss:$12 sps:$4 sm:$0xff]   ;;  %1341 = vmatprep.subr.bf16.mxu1 %v4006_v6  ;;  %v4012_v10 = vld [vmem:[#allocation9 + $0x214] ss:$12 sps:$4 sm:$0xff]  }
 0x11f   : > { %1290 = vmatprep.subr.bf16.mxu0 %v3997_v3  ;;  %v4008_v7 = vld [vmem:[#allocation9 + $0x228] ss:$12 sps:$4 sm:$0xff]   ;;  %v4003_v9 = vld [vmem:[#allocation9 + $0x64] ss:$12 sps:$4 sm:$0xff]   ;;  %v4005_v12 = vld [vmem:[#allocation9 + $0x60] ss:$12 sps:$4 sm:$0xff]  }
 0x120   : > { %1342 = vmatpush1.bf16.msra.mxu1 %v4008_v7  ;;  %v4014_v11 = vld [vmem:[#allocation9 + $0x210] ss:$12 sps:$4 sm:$0xff]   ;;  %v4009_v14 = vld [vmem:[#allocation9 + $0x4c] ss:$12 sps:$4 sm:$0xff]   ;;  %v4011_v17 = vld [vmem:[#allocation9 + $0x48] ss:$12 sps:$4 sm:$0xff]  }
 0x121   : > { %1343 = vmatprep.subr.bf16.mxu1 %v4012_v10  ;;  %v4018_v13 = vld [vmem:[#allocation9 + $0x1fc] ss:$12 sps:$4 sm:$0xff]   ;;  %v4020_v15 = vld [vmem:[#allocation9 + $0x1f8] ss:$12 sps:$4 sm:$0xff]   ;;  %v4015_v18 = vld [vmem:[#allocation9 + $0x34] ss:$12 sps:$4 sm:$0xff]  }
 0x122   : > { %1291 = vmatpush1.bf16.msra.mxu0 %v3999_v4  ;;  %v4024_v16 = vld [vmem:[#allocation9 + $0x1e4] ss:$12 sps:$4 sm:$0xff]   ;;  %v4026_v19 = vld [vmem:[#allocation9 + $0x1e0] ss:$12 sps:$4 sm:$0xff]   ;;  %v4021_v22 = vld [vmem:[#allocation9 + $0x1c] ss:$12 sps:$4 sm:$0xff]  }
 0x123   : > { %1292 = vmatprep.subr.bf16.mxu0 %v4000_v5  ;;  %v4030_v20 = vld [vmem:[#allocation9 + $0x1cc] ss:$12 sps:$4 sm:$0xff]   ;;  %v4017_v21 = vld [vmem:[#allocation9 + $0x30] ss:$12 sps:$4 sm:$0xff]   ;;  %v4032_v23 = vld [vmem:[#allocation9 + $0x1c8] ss:$12 sps:$4 sm:$0xff]  }
 0x124   : > { %1344 = vmatpush1.bf16.msra.mxu1 %v4014_v11  ;;  %v4036_v24 = vld [vmem:[#allocation9 + $0x1b4] ss:$12 sps:$4 sm:$0xff]   ;;  %v4023_v25 = vld [vmem:[#allocation9 + $0x18] ss:$12 sps:$4 sm:$0xff]   ;;  %v4038_v27 = vld [vmem:[#allocation9 + $0x1b0] ss:$12 sps:$4 sm:$0xff]  }
 0x125   : > { %1345 = vmatprep.subr.bf16.mxu1 %v4018_v13  ;;  %v4027_v26 = vld [vmem:[#allocation9 + $0x4] ss:$12 sps:$4 sm:$0xff]   ;;  %v4042_v28 = vld [vmem:[#allocation9 + $0x19c] ss:$12 sps:$4 sm:$0xff]   ;;  %v4029_v29 = vld [vmem:[#allocation9] ss:$12 sps:$4 sm:$0xff]  }
 0x126   : > { %1293 = vmatpush1.bf16.msra.mxu0 %v4002_v8  ;;  %v4033_v30 = vld [vmem:[#allocation9 + $0x16c] ss:$12 sps:$4 sm:$0xff]   ;;  %v4048_v32 = vld [vmem:[#allocation9 + $0x184] ss:$12 sps:$4 sm:$0xff]   ;;  %v4035_v33 = vld [vmem:[#allocation9 + $0x168] ss:$12 sps:$4 sm:$0xff]  }
 0x127   : > { %1294 = vmatprep.subr.bf16.mxu0 %v4003_v9  ;;  %v4044_v31 = vld [vmem:[#allocation9 + $0x198] ss:$12 sps:$4 sm:$0xff]   ;;  %v4039_v34 = vld [vmem:[#allocation9 + $0x154] ss:$12 sps:$4 sm:$0xff]   ;;  %v4041_v35 = vld [vmem:[#allocation9 + $0x150] ss:$12 sps:$4 sm:$0xff]  }
 0x128   : > { %1346 = vmatpush1.bf16.msra.mxu1 %v4020_v15  ;;  %v4050_v36 = vld [vmem:[#allocation9 + $0x180] ss:$12 sps:$4 sm:$0xff]   ;;  %v4054_v37 = vld [vmem:[#allocation9 + $0x170] ss:$12 sps:$4 sm:$0xff]   ;;  %v5117_v39 = vld [vmem:[#allocation3 + $0x8] ss:$12 sps:$4 sm:$0xff]  }
 0x129   : > { %1347 = vmatprep.subr.bf16.mxu1 %v4024_v16  ;;  %v4045_v38 = vld [vmem:[#allocation9 + $0x13c] ss:$12 sps:$4 sm:$0xff]   ;;  %v4060_v41 = vld [vmem:[#allocation9 + $0x158] ss:$12 sps:$4 sm:$0xff]   ;;  %v4053_v44 = vld [vmem:[#allocation9 + $0x120] ss:$12 sps:$4 sm:$0xff]  }
 0x12a   : > { %1295 = vmatpush1.bf16.msra.mxu0 %v4005_v12  ;;  %v4056_v40 = vld [vmem:[#allocation9 + $0xb0] ss:$12 sps:$4 sm:$0xff]   ;;  %v4047_v42 = vld [vmem:[#allocation9 + $0x138] ss:$12 sps:$4 sm:$0xff]   ;;  %v4065_v46 = vld [vmem:[#allocation9 + $0x140] ss:$12 sps:$4 sm:$0xff]  }
 0x12b   : > { %1296 = vmatprep.subr.bf16.mxu0 %v4009_v14  ;;  %v4051_v43 = vld [vmem:[#allocation9 + $0x124] ss:$12 sps:$4 sm:$0xff]   ;;  %v4078_v47 = vld [vmem:[#allocation3 + $0x4] ss:$12 sps:$4 sm:$0xff]   ;;  %v4057_v48 = vld [vmem:[#allocation9 + $0x10c] ss:$12 sps:$4 sm:$0xff]  }
 0x12c   : > { %1348 = vmatpush1.bf16.msra.mxu1 %v4026_v19  ;;  %v4061_v45 = vld [vmem:[#allocation9 + $0x98] ss:$12 sps:$4 sm:$0xff]   ;;  %v4059_v49 = vld [vmem:[#allocation9 + $0x108] ss:$12 sps:$4 sm:$0xff]   ;;  %v4066_v50 = vld [vmem:[#allocation9 + $0x80] ss:$12 sps:$4 sm:$0xff]   ;;  %1320 = vmatprep.mubr.bf16.mxu0 %v4078_v47 }
 0x12d   : > { %1349 = vmatprep.subr.bf16.mxu1 %v4030_v20  ;;  %v4070_v51 = vld [vmem:[#allocation9 + $0x128] ss:$12 sps:$4 sm:$0xff]   ;;  %v5121_v54 = vld [vmem:[#allocation3 + $0x20] ss:$12 sps:$4 sm:$0xff]   ;;  %v4081_v59 = vld [vmem:[#allocation9 + $0xf8] ss:$12 sps:$4 sm:$0xff]  }
 0x12e   : > { %1297 = vmatpush1.bf16.msra.mxu0 %v4011_v17  ;;  %v4062_v52 = vld [vmem:[#allocation9 + $0xf4] ss:$12 sps:$4 sm:$0xff]   ;;  %v4075_v55 = vld [vmem:[#allocation9 + $0x110] ss:$12 sps:$4 sm:$0xff]   ;;  %v4069_v60 = vld [vmem:[#allocation9 + $0xd8] ss:$12 sps:$4 sm:$0xff]  }
 0x12f   : > { %1298 = vmatprep.subr.bf16.mxu0 %v4015_v18  ;;  %v4071_v53 = vld [vmem:[#allocation9 + $0x68] ss:$12 sps:$4 sm:$0xff]   ;;  %v4064_v56 = vld [vmem:[#allocation9 + $0xf0] ss:$12 sps:$4 sm:$0xff]   ;;  %v4082_v62 = vld [vmem:[#allocation9 + $0x38] ss:$12 sps:$4 sm:$0xff]   ;;  %v857_v18 = vlaneseq }
 0x130   : > { %1350 = vmatpush1.bf16.msra.mxu1 %v4032_v23  ;;  %v4067_v57 = vld [vmem:[#allocation9 + $0xdc] ss:$12 sps:$4 sm:$0xff]   ;;  %v4072_v61 = vld [vmem:[#allocation9 + $0xc4] ss:$12 sps:$4 sm:$0xff]   ;;  %v4085_v63 = vld [vmem:[#allocation9 + $0xe0] ss:$12 sps:$4 sm:$0xff]  }
 0x131   : > { %1351 = vmatprep.subr.bf16.mxu1 %v4036_v24  ;;  %v4079_v58 = vld [vmem:[#allocation9 + $0x50] ss:$12 sps:$4 sm:$0xff]   ;;  %v4074_v0 = vld [vmem:[#allocation9 + $0xc0] ss:$12 sps:$4 sm:$0xff]   ;;  %v4091_v4 = vld [vmem:[#allocation9 + $0xc8] ss:$12 sps:$4 sm:$0xff]  }
 0x132   : > { %1299 = vmatpush1.bf16.msra.mxu0 %v4017_v21  ;;  %v4080_v1 = vld [vmem:[#allocation9 + $0x230] ss:$12 sps:$4 sm:$0xff]   ;;  %v4086_v5 = vld [vmem:[#allocation3 + $0x1c] ss:$12 sps:$4 sm:$0xff]   ;;  %v4092_v7 = vld [vmem:[#allocation9 + $0x8] ss:$12 sps:$4 sm:$0xff]  }
 0x133   : > { %1300 = vmatprep.subr.bf16.mxu0 %v4021_v22  ;;  %v4076_v3 = vld [vmem:[#allocation3] ss:$12 sps:$4 sm:$0xff]   ;;  %v4083_v6 = vld [vmem:[#allocation9 + $0x218] ss:$12 sps:$4 sm:$0xff]   ;;  %v4090_v8 = vld [vmem:[#allocation9 + $0x200] ss:$12 sps:$4 sm:$0xff]  }
 0x134   : > { %1352 = vmatpush1.bf16.msra.mxu1 %v4038_v27  ;;  %v4089_v9 = vld [vmem:[#allocation3 + $0x18] ss:$12 sps:$4 sm:$0xff]   ;;  %v4094_v11 = vld [vmem:[#allocation9 + $0x1d0] ss:$12 sps:$4 sm:$0xff]   ;;  %v4095_v12 = vld [vmem:[#allocation9 + $0x1b8] ss:$12 sps:$4 sm:$0xff]  }
 0x135   : > { %1353 = vmatprep.subr.bf16.mxu1 %v4042_v28  ;;  %v4093_v10 = vld [vmem:[#allocation9 + $0x1e8] ss:$12 sps:$4 sm:$0xff]   ;;  %v4096_v13 = vld [vmem:[#allocation9 + $0x1a0] ss:$12 sps:$4 sm:$0xff]   ;;  %v858_v20 = vshrl.u32 %v857_v18, 7 }
 0x136   : > { %1301 = vmatpush1.bf16.msra.mxu0 %v4023_v25  ;;  %v4097_v14 = vld [vmem:[#allocation9 + $0x188] ss:$12 sps:$4 sm:$0xff]   ;;  %v855_v23 = vld [vmem:[#allocation11] sm:$0x7] }
 0x137   : > { %1302 = vmatprep.subr.bf16.mxu0 %v4027_v26  ;;  %v859_v22 = vsub.s32 0, %v858_v20  ;;  %v863_v25 = vsub.s32 1, %v858_v20 }
 0x138   : > { %1354 = vmatpush1.bf16.msra.mxu1 %v4044_v31 }
 0x139   : > { %1355 = vmatprep.subr.bf16.mxu1 %v4048_v32  ;;  %v860_v26 = vrot.slane %v855_v23, %v859_v22  ;;  %v864_v28 = vrot.slane %v855_v23, %v863_v25 }
 0x13a   : > { %1303 = vmatpush1.bf16.msra.mxu0 %v4029_v29 }
 0x13b   : > { %1304 = vmatprep.subr.bf16.mxu0 %v4033_v30 }
 0x13c   : > { %1356 = vmatpush1.bf16.msra.mxu1 %v4050_v36 }
 0x13d   : > { %3562 = vmatprep.subr.bf16.mxu1 %v4054_v37 }
 0x13e   : > { %1305 = vmatpush2.bf16.msra.mxu0 %v4035_v33 }
 0x13f   : > { %1306 = vmatprep.subr.bf16.mxu0 %v4039_v34  ;;  %1374 = vmatmul.mubr.bf16.vlgmr.msra.gmra.mxu1 %v5117_v39 }
 0x140   : > { %3563 = vmatpush3.bf16.msra.mxu1 %v4056_v40  ;;  %1383 = vmatprep.mubr.bf16.mxu1 %v4727_v2  ;;  %v4088_v2 = vld [vmem:[#allocation9 + $0x20] ss:$12 sps:$4 sm:$0xff]  }
 0x141   : > { %3564 = vmatprep.subr.bf16.mxu1 %v4060_v41 }
 0x142   : > { %1307 = vmatpush2.bf16.msra.mxu0 %v4041_v35 }
 0x143   : > { %1308 = vmatprep.subr.bf16.mxu0 %v4045_v38 }
 0x144   : > { %3565 = vmatpush3.bf16.msra.mxu1 %v4061_v45 }
 0x145   : > { %3566 = vmatprep.subr.bf16.mxu1 %v4065_v46 }
 0x146   : > { %1309 = vmatpush2.bf16.msra.mxu0 %v4047_v42 }
 0x147   : > { %1310 = vmatprep.subr.bf16.mxu0 %v4051_v43  ;;  %1384 = vmatmul.mubr.bf16.gmra.mxu1 %v5121_v54 }
 0x148   : > { %3567 = vmatpush3.bf16.msra.mxu1 %v4066_v50  ;;  %1426 = vmatprep.mubr.bf16.mxu1 %v4078_v47 }
 0x149   : > { %3568 = vmatprep.subr.bf16.mxu1 %v4070_v51 }
 0x14a   : > { %1311 = vmatpush2.bf16.msra.mxu0 %v4053_v44 }
 0x14b   : > { %1312 = vmatprep.subr.bf16.mxu0 %v4057_v48 }
 0x14c   : > { %3569 = vmatpush3.bf16.msra.mxu1 %v4071_v53 }
 0x14d   : > { %3570 = vmatprep.subr.bf16.mxu1 %v4075_v55 }
 0x14e   : > { %1313 = vmatpush2.bf16.msra.mxu0 %v4059_v49 }
 0x14f   : > { %1314 = vmatprep.subr.bf16.mxu0 %v4062_v52 }
 0x150   : > { %3571 = vmatpush3.bf16.msra.mxu1 %v4079_v58 }
 0x151   : > { %3572 = vmatprep.subr.bf16.mxu1 %v4081_v59 }
 0x152   : > { %1315 = vmatpush2.bf16.msra.mxu0 %v4064_v56 }
 0x153   : > { %1316 = vmatprep.subr.bf16.mxu0 %v4067_v57 }
 0x154   : > { %3573 = vmatpush3.bf16.msra.mxu1 %v4082_v62 }
 0x155   : > { %3574 = vmatprep.subr.bf16.mxu1 %v4085_v63 }
 0x156   : > { %1317 = vmatpush2.bf16.msra.mxu0 %v4069_v60  ;;  %v867_v60 = vsub.s32 2, %v858_v20 }
 0x157   : > { %1318 = vmatprep.subr.bf16.mxu0 %v4072_v61 }
 0x158   : > { %3575 = vmatpush3.bf16.msra.mxu1 %v4088_v2  ;;  %v868_v63 = vrot.slane %v855_v23, %v867_v60 }
 0x159   : > { %3576 = vmatprep.subr.bf16.mxu1 %v4091_v4 }
 0x15a   : > { %1319 = vmatpush2.bf16.msra.mxu0 %v4074_v0 }
 0x15b   : > { %3694 = vmatprep.subr.bf16.mxu0 %v4080_v1 }
 0x15c   : > { %3577 = vmatpush3.bf16.msra.mxu1 %v4092_v7 }
 0x15d   : > { %1321 = vmatmul.mubr.bf16.vlgmr.msra.gmra.mxu0 %v4076_v3 }
 0x15e   : > { %3695 = vmatpush3.bf16.msra.mxu0 %v4080_v1  ;;  %1330 = vmatprep.mubr.bf16.mxu0 %v4086_v5 }
 0x15f   : > { %3696 = vmatprep.subr.bf16.mxu0 %v4083_v6  ;;  %1427 = vmatmul.mubr.bf16.vlgmr.msra.gmra.mxu1 %v4076_v3 }
 0x160   : > { %1434 = vmatprep.mubr.bf16.mxu1 %v4086_v5 }
 0x162   : > { %3697 = vmatpush3.bf16.msra.mxu0 %v4083_v6 }
 0x163   : > { %3698 = vmatprep.subr.bf16.mxu0 %v4090_v8 }
 0x165   : > { %1331 = vmatmul.mubr.bf16.gmra.mxu0 %v4089_v9 }
 0x166   : > { %3699 = vmatpush3.bf16.msra.mxu0 %v4090_v8  ;;  %3710 = vmatprep.mubr.bf16.mxu0 %v5117_v39 }
 0x167   : > { %3700 = vmatprep.subr.bf16.mxu0 %v4093_v10  ;;  %1435 = vmatmul.mubr.bf16.gmra.mxu1 %v4089_v9 }
 0x16a   : > { %3701 = vmatpush3.bf16.msra.mxu0 %v4093_v10 }
 0x16b   : > { %3702 = vmatprep.subr.bf16.mxu0 %v4094_v11 }
 0x16e   : > { %3703 = vmatpush3.bf16.msra.mxu0 %v4094_v11 }
 0x16f   : > { %3704 = vmatprep.subr.bf16.mxu0 %v4095_v12 }
 0x172   : > { %3705 = vmatpush3.bf16.msra.mxu0 %v4095_v12 }
 0x173   : > { %3706 = vmatprep.subr.bf16.mxu0 %v4096_v13 }
 0x176   : > { %3707 = vmatpush3.bf16.msra.mxu0 %v4096_v13 }
 0x177   : > { %3708 = vmatprep.subr.bf16.mxu0 %v4097_v14 }
 0x17a   : > { %3709 = vmatpush3.bf16.msra.mxu0 %v4097_v14 }
 0x17d   : > { %3711 = vmatmul.mubr.bf16.vlgmr.msra.gmra.mxu0 %v5121_v54 }
 0x1ff   : > { %v1375_v15 = vpop.f32.mrf.mxu1 }
 0x201   : > { %v1377_v16 = vpop.f32.mrf.mxu1 }
 0x203   : > { %v1379_v17 = vpop.f32.mrf.mxu1 }
 0x205   : > { %v1381_v19 = vpop.f32.mrf.mxu1 }
 0x207   : > { %v1385_v21 = vpop.f32.mrf.mxu1 }
 0x209   : > { %v1387_v24 = vpop.f32.mrf.mxu1 }
 0x20b   : > { %v1389_v27 = vpop.f32.mrf.mxu1 }
 0x20d   : > { %v1391_v32 = vpop.f32.mrf.mxu1 }
 0x21d   : > { %v1322_v29 = vpop.f32.mrf.mxu0 }
 0x21e   : > { %v1323_v30 = vadd.f32 %v1322_v29, %v860_v26 }
 0x21f   : > { %v1324_v31 = vpop.f32.mrf.mxu0  ;;  %v3578_v39 = vpop.f32.mrf.mxu1 }
 0x220   : > { %v1376_v33 = vadd.f32 %v1375_v15, %v1323_v30  ;;  %v1325_v34 = vadd.f32 %v1324_v31, %v864_v28 }
 0x221   : > { %v1326_v35 = vpop.f32.mrf.mxu0  ;;  %v3579_v43 = vpop.f32.mrf.mxu1 }
 0x222   : > { %1492 = vst [vmem:[#allocation2 + $0x30] sm:$0xff] %v1376_v33  ;;  %v1378_v36 = vadd.f32 %v1377_v16, %v1325_v34  ;;  %v1327_v37 = vadd.f32 %v1326_v35, %v860_v26  ;;  %v3580_v1 = vadd.f32 %v3579_v43, %v3578_v39 }
 0x223   : > { %v1328_v38 = vpop.f32.mrf.mxu0  ;;  %v3581_v47 = vpop.f32.mrf.mxu1 }
 0x224   : > { %1493 = vst [vmem:[#allocation2] sm:$0xff] %v1378_v36  ;;  %v1380_v40 = vadd.f32 %v1379_v17, %v1327_v37  ;;  %v1329_v41 = vadd.f32 %v1328_v38, %v864_v28  ;;  %v1429_v7 = vadd.f32 %v3580_v1, %v868_v63 }
 0x225   : > { %v1332_v42 = vpop.f32.mrf.mxu0  ;;  %v3582_v51 = vpop.f32.mrf.mxu1 }
 0x226   : > { %1495 = vst [vmem:[#allocation2 + $0x18] sm:$0xff] %v1380_v40  ;;  %v1382_v44 = vadd.f32 %v1381_v19, %v1329_v41  ;;  %v1333_v45 = vadd.f32 %v1332_v42, %v860_v26  ;;  %v3583_v5 = vadd.f32 %v3582_v51, %v3581_v47 }
 0x227   : > { %v1334_v46 = vpop.f32.mrf.mxu0  ;;  %v3584_v57 = vpop.f32.mrf.mxu1 }
 0x228   : > { %1496 = vst [vmem:[#allocation2 + $0x50] sm:$0xff] %v1382_v44  ;;  %v1386_v48 = vadd.f32 %v1385_v21, %v1333_v45  ;;  %v1335_v49 = vadd.f32 %v1334_v46, %v864_v28  ;;  %v1432_v13 = vadd.f32 %v3583_v5, %v868_v63 }
 0x229   : > { %v1336_v50 = vpop.f32.mrf.mxu0  ;;  %v3585_v59 = vpop.f32.mrf.mxu1 }
 0x22a   : > { %1498 = vst [vmem:[#allocation2 + $0x8] sm:$0xff] %v1386_v48  ;;  %v1388_v52 = vadd.f32 %v1387_v24, %v1335_v49  ;;  %v1337_v53 = vadd.f32 %v1336_v50, %v860_v26  ;;  %v3586_v62 = vadd.f32 %v3585_v59, %v3584_v57 }
 0x22b   : > { %v1338_v54 = vpop.f32.mrf.mxu0  ;;  %v3587_v61 = vpop.f32.mrf.mxu1 }
 0x22c   : > { %1499 = vst [vmem:[#allocation2 + $0x38] sm:$0xff] %v1388_v52  ;;  %v1390_v55 = vadd.f32 %v1389_v27, %v1337_v53  ;;  %v1339_v56 = vadd.f32 %v1338_v54, %v864_v28  ;;  %v1437_v2 = vadd.f32 %v3586_v62, %v868_v63 }
 0x22d   : > { %v3588_v0 = vpop.f32.mrf.mxu1 }
 0x22e   : > { %1501 = vst [vmem:[#allocation2 + $0x48] sm:$0xff] %v1390_v55  ;;  %v1392_v58 = vadd.f32 %v1391_v32, %v1339_v56  ;;  %v3589_v3 = vadd.f32 %v3588_v0, %v3587_v61 }
 0x230   : > { %1502 = vst [vmem:[#allocation2 + $0x10] sm:$0xff] %v1392_v58  ;;  %v1440_v10 = vadd.f32 %v3589_v3, %v868_v63 }
 0x23d   : > { %v3712_v4 = vpop.f32.mrf.mxu0 }
 0x23e   : > { %v1486_v6 = vadd.f32 %v3712_v4, %v1437_v2 }
 0x23f   : > { %v1477_v8 = vpop.f32.mrf.mxu0 }
 0x240   : > { %1500 = vst [vmem:[#allocation2 + $0x28] sm:$0xff] %v1486_v6  ;;  %v1478_v9 = vadd.f32 %v1477_v8, %v1429_v7 }
 0x241   : > { %v3713_v11 = vpop.f32.mrf.mxu0 }
 0x242   : > { %1494 = vst [vmem:[#allocation2 + $0x58] sm:$0xff] %v1478_v9  ;;  %v1489_v12 = vadd.f32 %v3713_v11, %v1440_v10 }
 0x243   : > { %v1480_v14 = vpop.f32.mrf.mxu0 }
 0x244   : > { %1503 = vst [vmem:[#allocation2 + $0x40] sm:$0xff] %v1489_v12  ;;  %v1481_v15 = vadd.f32 %v1480_v14, %v1432_v13 }
 0x246   : > { %1497 = vst [vmem:[#allocation2 + $0x20] sm:$0xff] %v1481_v15 }
 0x247 PF: > { %v4100_v16 = vld [vmem:[#allocation3 + $0x1c] ss:$12 sps:$4 sm:$0xff]   ;;  %v4102_v17 = vld [vmem:[#allocation3 + $0x18] ss:$12 sps:$4 sm:$0xff]   ;;  %v4728_v18 = vmov 0   ;;  %vm1558_vm0 = vcmask 261120  }
 0x248   : > { %1597 = vmatprep.mubr.bf16.mxu1 %v4728_v18  ;;  %4098 = vset.pattern.permute.xlu0 %v4728_v18  ;;  %v4103_v19 = vld [vmem:[#allocation3 + $0x4] ss:$12 sps:$4 sm:$0xff]   ;;  %v4105_v20 = vld [vmem:[#allocation3] ss:$12 sps:$4 sm:$0xff]   ;;  %v4109_v24 = vld [vmem:[#allocation3 + $0x8] ss:$12 sps:$4 sm:$0xff]  }
 0x249   : > { %1577 = vmatprep.subr.bf16.mxu1 %v4100_v16  ;;  %4099 = vset.pattern.permute.xlu1 %v4728_v18  ;;  %v4107_v21 = vld [vmem:[#allocation3 + $0x20] ss:$12 sps:$4 sm:$0xff]   ;;  %v1669_v26 = vld [vmem:[%s5112_s16 + $0x10] sm:$0xff]  ;;  %v4110_v27 = vld [vmem:[%s5081_s2 + $0xac] ss:$12 sps:$4 sm:$0xff]   ;;  %p3508_p8 = scmp.ne.s32.totalorder %s4839_s25, 8 }
 0x24a   : > { %1578 = vmatpush1.bf16.msra.mxu1 %v4102_v17  ;;  %v4106_v22 = vld [vmem:[%s634_s0] sm:$0xff]   ;;  %v1668_v25 = vld [vmem:[%s5112_s16 + $0x8] sm:$0xff]  ;;  %1683 = vperm.xlu1 %4099, %v1669_v26   ;;  %v1670_v29 = vld [vmem:[%s5112_s16 + $0x18] sm:$0xff]  ;;  %s5380_s6 = sld [smem:[#allocation43_spill]] (!%p3508_p8) }
 0x24b   : > { %1579 = vmatprep.subr.bf16.mxu1 %v4103_v19  ;;  %v1667_v23 = vld [vmem:[%s5112_s16] sm:$0xff]  ;;  %2201 = vmatprep.subr.bf16.mxu0 %v4110_v27  ;;  %v4108_v32 = vld [vmem:[%s634_s0 + $0x8] sm:$0xff]  }
 0x24c   : > { %1673 = vperm.xlu0 %4098, %v1667_v23   ;;  %v4112_v28 = vld [vmem:[%s5081_s2 + $0xa8] ss:$12 sps:$4 sm:$0xff]   ;;  %v4115_v31 = vld [vmem:[%s5081_s2 + $0x90] ss:$12 sps:$4 sm:$0xff]   ;;  %v4118_v34 = vld [vmem:[%s5081_s2 + $0x78] ss:$12 sps:$4 sm:$0xff]  }
 0x24d   : > { %v4113_v30 = vld [vmem:[%s5081_s2 + $0x94] ss:$12 sps:$4 sm:$0xff]   ;;  %2202 = vmatpush1.bf16.msra.mxu0 %v4112_v28  ;;  %v4116_v33 = vld [vmem:[%s5081_s2 + $0x7c] ss:$12 sps:$4 sm:$0xff]   ;;  %v4119_v35 = vld [vmem:[%s5081_s2 + $0x64] ss:$12 sps:$4 sm:$0xff]  }
 0x24e   : > { %1580 = vmatpush1.bf16.msra.mxu1 %v4105_v20  ;;  %1688 = vperm.xlu1 %4099, %v1670_v29   ;;  %v4121_v36 = vld [vmem:[%s5081_s2 + $0x60] ss:$12 sps:$4 sm:$0xff]   ;;  %v4124_v38 = vld [vmem:[%s5081_s2 + $0x48] ss:$12 sps:$4 sm:$0xff]   ;;  %v4127_v42 = vld [vmem:[%s5081_s2 + $0x30] ss:$12 sps:$4 sm:$0xff]  }
 0x24f   : > { %3714 = vmatprep.subr.bf16.mxu1 %v4107_v21  ;;  %2203 = vmatprep.subr.bf16.mxu0 %v4113_v30  ;;  %v4122_v37 = vld [vmem:[%s5081_s2 + $0x4c] ss:$12 sps:$4 sm:$0xff]   ;;  %v4146_v39 = vld [vmem:[%s5081_s2 + $0x228] ss:$12 sps:$4 sm:$0xff]   ;;  %v4152_v44 = vld [vmem:[%s5081_s2 + $0x210] ss:$12 sps:$4 sm:$0xff]  }
 0x250   : > { %1678 = vperm.xlu0 %4098, %v1668_v25   ;;  %v4148_v40 = vld [vmem:[%s5081_s2 + $0x22c] ss:$12 sps:$4 sm:$0xff]   ;;  %v4125_v41 = vld [vmem:[%s5081_s2 + $0x34] ss:$12 sps:$4 sm:$0xff]   ;;  %v4128_v45 = vld [vmem:[%s5081_s2 + $0x1c] ss:$12 sps:$4 sm:$0xff]  }
 0x251   : > { %3432 = vmatmul.mubr.msk.bf16.vlgmr.msra.gmra.mxu1 %vm1558_vm0, %v4106_v22  ;;  %2204 = vmatpush1.bf16.msra.mxu0 %v4115_v31  ;;  %v4154_v43 = vld [vmem:[%s5081_s2 + $0x214] ss:$12 sps:$4 sm:$0xff]   ;;  %v4130_v46 = vld [vmem:[%s5081_s2 + $0x18] ss:$12 sps:$4 sm:$0xff]   ;;  %v4139_v52 = vld [vmem:[%s5081_s2 + $0x150] ss:$12 sps:$4 sm:$0xff]  }
 0x252   : > { %3715 = vmatpush3.bf16.msra.mxu1 %v4107_v21  ;;  %1607 = vmatprep.mubr.bf16.mxu1 %v4728_v18  ;;  %v4131_v47 = vld [vmem:[%s5081_s2 + $0x4] ss:$12 sps:$4 sm:$0xff]   ;;  %v4133_v48 = vld [vmem:[%s5081_s2] ss:$12 sps:$4 sm:$0xff]   ;;  %v4136_v50 = vld [vmem:[%s5081_s2 + $0x168] ss:$12 sps:$4 sm:$0xff]  }
 0x253   : > { %3716 = vmatprep.subr.bf16.mxu1 %v4109_v24  ;;  %2205 = vmatprep.subr.bf16.mxu0 %v4116_v33  ;;  %v4134_v49 = vld [vmem:[%s5081_s2 + $0x16c] ss:$12 sps:$4 sm:$0xff]   ;;  %v4137_v51 = vld [vmem:[%s5081_s2 + $0x154] ss:$12 sps:$4 sm:$0xff]   ;;  %v4140_v53 = vld [vmem:[%s5081_s2 + $0x13c] ss:$12 sps:$4 sm:$0xff]  }
 0x254   : > { %v4142_v54 = vld [vmem:[%s5081_s2 + $0x138] ss:$12 sps:$4 sm:$0xff]   ;;  %v4145_v56 = vld [vmem:[%s5081_s2 + $0x120] ss:$12 sps:$4 sm:$0xff]   ;;  %v4151_v58 = vld [vmem:[%s5081_s2 + $0x108] ss:$12 sps:$4 sm:$0xff]  }
 0x255   : > { %2206 = vmatpush1.bf16.msra.mxu0 %v4118_v34  ;;  %v4143_v55 = vld [vmem:[%s5081_s2 + $0x124] ss:$12 sps:$4 sm:$0xff]   ;;  %v4149_v57 = vld [vmem:[%s5081_s2 + $0x10c] ss:$12 sps:$4 sm:$0xff]   ;;  %v4155_v59 = vld [vmem:[%s5081_s2 + $0xf4] ss:$12 sps:$4 sm:$0xff]  }
 0x256   : > { %3717 = vmatpush3.bf16.msra.mxu1 %v4109_v24  ;;  %2207 = vmatprep.subr.bf16.mxu0 %v4119_v35  ;;  %v4157_v60 = vld [vmem:[%s5081_s2 + $0xf0] ss:$12 sps:$4 sm:$0xff]   ;;  %v4158_v62 = vld [vmem:[%s5081_s2 + $0x1f8] ss:$12 sps:$4 sm:$0xff]   ;;  %v4164_v2 = vld [vmem:[%s5081_s2 + $0x1e0] ss:$12 sps:$4 sm:$0xff]  }
 0x257   : > { %2254 = vmatprep.subr.bf16.mxu1 %v4148_v40  ;;  %v4160_v61 = vld [vmem:[%s5081_s2 + $0x1fc] ss:$12 sps:$4 sm:$0xff]   ;;  %v4163_v0 = vld [vmem:[%s5081_s2 + $0xd8] ss:$12 sps:$4 sm:$0xff]   ;;  %v4169_v4 = vld [vmem:[%s5081_s2 + $0xc0] ss:$12 sps:$4 sm:$0xff]  }
 0x258   : > { %v4161_v63 = vld [vmem:[%s5081_s2 + $0xdc] ss:$12 sps:$4 sm:$0xff]   ;;  %v4166_v1 = vld [vmem:[%s5081_s2 + $0x1e4] ss:$12 sps:$4 sm:$0xff]   ;;  %v4172_v5 = vld [vmem:[%s5081_s2 + $0x1cc] ss:$12 sps:$4 sm:$0xff]  }
 0x259   : > { %3433 = vmatmul.mubr.msk.bf16.gmra.mxu1 %vm1558_vm0, %v4108_v32  ;;  %2208 = vmatpush1.bf16.msra.mxu0 %v4121_v36  ;;  %v4167_v3 = vld [vmem:[%s5081_s2 + $0xc4] ss:$12 sps:$4 sm:$0xff]   ;;  %v4170_v6 = vld [vmem:[%s5081_s2 + $0x1c8] ss:$12 sps:$4 sm:$0xff]   ;;  %v4182_v13 = vld [vmem:[%s5081_s2 + $0x180] ss:$12 sps:$4 sm:$0xff]  }
 0x25a   : > { %3718 = vmatprep.mubr.msk.bf16.mxu1 %vm1558_vm0, %v4106_v22  ;;  %2209 = vmatprep.subr.bf16.mxu0 %v4122_v37  ;;  %v4173_v7 = vld [vmem:[%s5081_s2 + $0x230] ss:$12 sps:$4 sm:$0xff]   ;;  %v4176_v8 = vld [vmem:[%s5081_s2 + $0x1b4] ss:$12 sps:$4 sm:$0xff]   ;;  %v4178_v11 = vld [vmem:[%s5081_s2 + $0x198] ss:$12 sps:$4 sm:$0xff]  }
 0x25b   : > { %v4174_v9 = vld [vmem:[%s5081_s2 + $0x1b0] ss:$12 sps:$4 sm:$0xff]   ;;  %v4177_v31 = vld [vmem:[%s5081_s2 + $0x218] ss:$12 sps:$4 sm:$0xff]   ;;  %v4181_v36 = vld [vmem:[%s5081_s2 + $0x200] ss:$12 sps:$4 sm:$0xff]  }
 0x25c   : > { %v4180_v10 = vld [vmem:[%s5081_s2 + $0x19c] ss:$12 sps:$4 sm:$0xff]   ;;  %v4184_v12 = vld [vmem:[%s5081_s2 + $0x184] ss:$12 sps:$4 sm:$0xff]  }
 0x25d   : > { %2210 = vmatpush1.bf16.msra.mxu0 %v4124_v38  ;;  %v4186_v14 = vld [vmem:[%s5081_s2 + $0x170] ss:$12 sps:$4 sm:$0xff]  }
 0x25e   : > { %2211 = vmatprep.subr.bf16.mxu0 %v4125_v41 }
 0x261   : > { %3719 = vmatmul.mubr.msk.bf16.vlgmr.msra.gmra.mxu1 %vm1558_vm0, %v4108_v32  ;;  %2212 = vmatpush1.bf16.msra.mxu0 %v4127_v42 }
 0x262   : > { %2286 = vmatprep.mubr.bf16.mxu1 %v4728_v18  ;;  %2255 = vmatpush1.bf16.msra.mxu1 %v4146_v39 }
 0x263   : > { %2256 = vmatprep.subr.bf16.mxu1 %v4154_v43  ;;  %2213 = vmatprep.subr.bf16.mxu0 %v4128_v45 }
 0x265   : > { %2214 = vmatpush1.bf16.msra.mxu0 %v4130_v46 }
 0x266   : > { %2257 = vmatpush1.bf16.msra.mxu1 %v4152_v44  ;;  %2215 = vmatprep.subr.bf16.mxu0 %v4131_v47  ;;  %v4185_v44 = vld [vmem:[%s5081_s2 + $0x1e8] ss:$12 sps:$4 sm:$0xff]   ;;  %v4188_v47 = vld [vmem:[%s5081_s2 + $0x1d0] ss:$12 sps:$4 sm:$0xff]  }
 0x267   : > { %2258 = vmatprep.subr.bf16.mxu1 %v4160_v61  ;;  %v4195_v61 = vld [vmem:[%s5081_s2 + $0x128] ss:$12 sps:$4 sm:$0xff]  }
 0x269   : > { %2216 = vmatpush1.bf16.msra.mxu0 %v4133_v48 }
 0x26a   : > { %2217 = vmatprep.subr.bf16.mxu0 %v4134_v49  ;;  %2259 = vmatpush1.bf16.msra.mxu1 %v4158_v62  ;;  %v4197_v62 = vld [vmem:[%s5081_s2 + $0x188] ss:$12 sps:$4 sm:$0xff]  }
 0x26b   : > { %2260 = vmatprep.subr.bf16.mxu1 %v4166_v1  ;;  %v4200_v1 = vld [vmem:[%s5081_s2 + $0xf8] ss:$12 sps:$4 sm:$0xff]  }
 0x26d   : > { %2218 = vmatpush2.bf16.msra.mxu0 %v4136_v50  ;;  %v4187_v50 = vld [vmem:[%s5081_s2 + $0xb0] ss:$12 sps:$4 sm:$0xff]  }
 0x26e   : > { %2219 = vmatprep.subr.bf16.mxu0 %v4137_v51  ;;  %2261 = vmatpush1.bf16.msra.mxu1 %v4164_v2  ;;  %v4201_v2 = vld [vmem:[%s5081_s2 + $0x38] ss:$12 sps:$4 sm:$0xff]  }
 0x26f   : > { %2262 = vmatprep.subr.bf16.mxu1 %v4172_v5  ;;  %v4204_v5 = vld [vmem:[%s5081_s2 + $0xc8] ss:$12 sps:$4 sm:$0xff]  }
 0x271   : > { %2220 = vmatpush2.bf16.msra.mxu0 %v4139_v52  ;;  %v4189_v52 = vld [vmem:[%s5081_s2 + $0x158] ss:$12 sps:$4 sm:$0xff]  }
 0x272   : > { %2221 = vmatprep.subr.bf16.mxu0 %v4140_v53  ;;  %2263 = vmatpush1.bf16.msra.mxu1 %v4170_v6  ;;  %v4191_v53 = vld [vmem:[%s5081_s2 + $0x1b8] ss:$12 sps:$4 sm:$0xff]   ;;  %v4205_v6 = vld [vmem:[%s5081_s2 + $0x8] ss:$12 sps:$4 sm:$0xff]  }
 0x273   : > { %2264 = vmatprep.subr.bf16.mxu1 %v4176_v8 }
 0x275   : > { %2222 = vmatpush2.bf16.msra.mxu0 %v4142_v54  ;;  %v4190_v54 = vld [vmem:[%s5081_s2 + $0x98] ss:$12 sps:$4 sm:$0xff]  }
 0x276   : > { %2223 = vmatprep.subr.bf16.mxu0 %v4143_v55  ;;  %2265 = vmatpush1.bf16.msra.mxu1 %v4174_v9 }
 0x277   : > { %2266 = vmatprep.subr.bf16.mxu1 %v4180_v10 }
 0x279   : > { %2224 = vmatpush2.bf16.msra.mxu0 %v4145_v56  ;;  %v4192_v56 = vld [vmem:[%s5081_s2 + $0x140] ss:$12 sps:$4 sm:$0xff]  }
 0x27a   : > { %2225 = vmatprep.subr.bf16.mxu0 %v4149_v57  ;;  %2267 = vmatpush1.bf16.msra.mxu1 %v4178_v11  ;;  %v4194_v57 = vld [vmem:[%s5081_s2 + $0x1a0] ss:$12 sps:$4 sm:$0xff]  }
 0x27b   : > { %2268 = vmatprep.subr.bf16.mxu1 %v4184_v12  ;;  %v1709_v11 = vld [vmem:[#allocation2 + $0x30] sm:$0xff] }
 0x27d   : > { %2226 = vmatpush2.bf16.msra.mxu0 %v4151_v58 }
 0x27e   : > { %2227 = vmatprep.subr.bf16.mxu0 %v4155_v59  ;;  %2269 = vmatpush1.bf16.msra.mxu1 %v4182_v13  ;;  %v4193_v59 = vld [vmem:[%s5081_s2 + $0x80] ss:$12 sps:$4 sm:$0xff]  }
 0x27f   : > { %3604 = vmatprep.subr.bf16.mxu1 %v4186_v14 }
 0x281   : > { %2228 = vmatpush2.bf16.msra.mxu0 %v4157_v60 }
 0x282   : > { %2229 = vmatprep.subr.bf16.mxu0 %v4161_v63  ;;  %v4198_v63 = vld [vmem:[%s5081_s2 + $0x110] ss:$12 sps:$4 sm:$0xff]  }
 0x285   : > { %2230 = vmatpush2.bf16.msra.mxu0 %v4163_v0  ;;  %v4199_v0 = vld [vmem:[%s5081_s2 + $0x50] ss:$12 sps:$4 sm:$0xff]  }
 0x286   : > { %2231 = vmatprep.subr.bf16.mxu0 %v4167_v3  ;;  %v4202_v3 = vld [vmem:[%s5081_s2 + $0xe0] ss:$12 sps:$4 sm:$0xff]  }
 0x289   : > { %2232 = vmatpush2.bf16.msra.mxu0 %v4169_v4  ;;  %v4203_v4 = vld [vmem:[%s5081_s2 + $0x20] ss:$12 sps:$4 sm:$0xff]  }
 0x28a   : > { %3722 = vmatprep.subr.bf16.mxu0 %v4173_v7 }
 0x2c5   : > { %v1684_v21 = vpop.permute.xlu1 %1683 }
 0x2c7   : > { %v1674_v15 = vpop.permute.xlu0 %1673 }
 0x2c9   : > { %v1689_v32 = vpop.permute.xlu1 %1688 }
 0x2cb   : > { %v1679_v19 = vpop.permute.xlu0 %1678 }
 0x311   : > { %v1599_v16 = vpop.f32.mrf.mxu1 }
 0x312   : > { %v1691_v26 = vmul.f32 %v1674_v15, %v1599_v16 }
 0x313   : > { %v1601_v17 = vpop.f32.mrf.mxu1 }
 0x314   : > { %v1692_v24 = vmul.f32 %v1674_v15, %v1601_v17 }
 0x315   : > { %v1603_v20 = vpop.f32.mrf.mxu1 }
 0x316   : > { %v1694_v22 = vmul.f32 %v1679_v19, %v1603_v20  ;;  %v1712_v20 = vld [vmem:[#allocation2 + $0x18] sm:$0xff] }
 0x317   : > { %v1605_v23 = vpop.f32.mrf.mxu1 }
 0x318   : > { %v1695_v25 = vmul.f32 %v1679_v19, %v1605_v23  ;;  %v5193_v29 = vpack.c.bf16 %v1694_v22, %v1691_v26 }
 0x319   : > { %v1609_v27 = vpop.f32.mrf.mxu1 }
 0x31a   : > { %v1704_v28 = vpack.c.bf16 %v1695_v25, %v1692_v24  ;;  %v1697_v39 = vmul.f32 %v1684_v21, %v1609_v27  ;;  %v1713_v25 = vld [vmem:[#allocation2 + $0x50] sm:$0xff] }
 0x31b   : > { %v1611_v30 = vpop.f32.mrf.mxu1 }
 0x31c   : > { %2233 = vmatprep.mubr.bf16.mxu0 %v1704_v28  ;;  %v1698_v37 = vmul.f32 %v1684_v21, %v1611_v30 }
 0x31d   : > { %v1613_v33 = vpop.f32.mrf.mxu1  ;;  %2234 = vmatmul.mubr.bf16.vlgmr.msra.gmra.mxu0 %v5193_v29 }
 0x31e   : > { %3723 = vmatpush3.bf16.msra.mxu0 %v4173_v7  ;;  %v1700_v34 = vmul.f32 %v1689_v32, %v1613_v33 }
 0x31f   : > { %v1615_v35 = vpop.f32.mrf.mxu1  ;;  %3724 = vmatprep.subr.bf16.mxu0 %v4177_v31 }
 0x320   : > { %v1701_v38 = vmul.f32 %v1689_v32, %v1615_v35  ;;  %v5200_v42 = vpack.c.bf16 %v1700_v34, %v1697_v39  ;;  %v1716_v34 = vld [vmem:[#allocation2 + $0x38] sm:$0xff] }
 0x321   : > { %v3720_v40 = vpop.f32.mrf.mxu1 }
 0x322   : > { %v5198_v41 = vpack.c.bf16 %v1701_v38, %v1698_v37  ;;  %3725 = vmatpush3.bf16.msra.mxu0 %v4177_v31  ;;  %v1699_v58 = vmul.f32 %v3720_v40, %v1684_v21  ;;  %v1718_v38 = vld [vmem:[#allocation2 + $0x48] sm:$0xff] }
 0x323   : > { %v1652_v43 = vpop.f32.mrf.mxu1  ;;  %3726 = vmatprep.subr.bf16.mxu0 %v4181_v36 }
 0x324   : > { %2243 = vmatprep.mubr.bf16.mxu0 %v5198_v41  ;;  %v1693_v48 = vmul.f32 %v1674_v15, %v1652_v43  ;;  %v1710_v15 = vld [vmem:[#allocation2] sm:$0xff]  ;;  %v1719_v43 = vld [vmem:[#allocation2 + $0x10] sm:$0xff] }
 0x325   : > { %v3721_v45 = vpop.f32.mrf.mxu1  ;;  %2244 = vmatmul.mubr.bf16.gmra.mxu0 %v5200_v42 }
 0x326   : > { %3727 = vmatpush3.bf16.msra.mxu0 %v4181_v36  ;;  %v1702_v55 = vmul.f32 %v3721_v45, %v1689_v32 }
 0x327   : > { %v1655_v46 = vpop.f32.mrf.mxu1  ;;  %3728 = vmatprep.subr.bf16.mxu0 %v4185_v44 }
 0x328   : > { %v1696_v49 = vmul.f32 %v1679_v19, %v1655_v46  ;;  %v1708_v60 = vpack.c.bf16 %v1702_v55, %v1699_v58 }
 0x32a   : > { %v1705_v51 = vpack.c.bf16 %v1696_v49, %v1693_v48  ;;  %3729 = vmatpush3.bf16.msra.mxu0 %v4185_v44 }
 0x32b   : > { %3730 = vmatprep.subr.bf16.mxu0 %v4188_v47 }
 0x32c   : > { %2287 = vmatmul.mubr.bf16.vlgmr.msra.gmra.mxu1 %v1705_v51  ;;  %3738 = vmatprep.mubr.bf16.mxu0 %v1705_v51 }
 0x32d   : > { %3605 = vmatpush3.bf16.msra.mxu1 %v4187_v50  ;;  %2296 = vmatprep.mubr.bf16.mxu1 %v4728_v18  ;;  %v4196_v18 = vld [vmem:[%s5081_s2 + $0x68] ss:$12 sps:$4 sm:$0xff]  }
 0x32e   : > { %3731 = vmatpush3.bf16.msra.mxu0 %v4188_v47  ;;  %3606 = vmatprep.subr.bf16.mxu1 %v4189_v52 }
 0x32f   : > { %3732 = vmatprep.subr.bf16.mxu0 %v4191_v53 }
 0x331   : > { %3607 = vmatpush3.bf16.msra.mxu1 %v4190_v54  ;;  %v1711_v54 = vld [vmem:[#allocation2 + $0x58] sm:$0xff] }
 0x332   : > { %3733 = vmatpush3.bf16.msra.mxu0 %v4191_v53  ;;  %3608 = vmatprep.subr.bf16.mxu1 %v4192_v56 }
 0x333   : > { %3734 = vmatprep.subr.bf16.mxu0 %v4194_v57 }
 0x334   : > { %2297 = vmatmul.mubr.bf16.gmra.mxu1 %v1708_v60 }
 0x335   : > { %3609 = vmatpush3.bf16.msra.mxu1 %v4193_v59  ;;  %2339 = vmatprep.mubr.bf16.mxu1 %v1704_v28 }
 0x336   : > { %3735 = vmatpush3.bf16.msra.mxu0 %v4194_v57  ;;  %3610 = vmatprep.subr.bf16.mxu1 %v4195_v61  ;;  %v1714_v61 = vld [vmem:[#allocation2 + $0x20] sm:$0xff] }
 0x337   : > { %3736 = vmatprep.subr.bf16.mxu0 %v4197_v62 }
 0x339   : > { %3611 = vmatpush3.bf16.msra.mxu1 %v4196_v18 }
 0x33a   : > { %3737 = vmatpush3.bf16.msra.mxu0 %v4197_v62  ;;  %3612 = vmatprep.subr.bf16.mxu1 %v4198_v63 }
 0x33d   : > { %3613 = vmatpush3.bf16.msra.mxu1 %v4199_v0  ;;  %3739 = vmatmul.mubr.bf16.vlgmr.msra.gmra.mxu0 %v1708_v60 }
 0x33e   : > { %3614 = vmatprep.subr.bf16.mxu1 %v4200_v1 }
 0x341   : > { %3615 = vmatpush3.bf16.msra.mxu1 %v4201_v2  ;;  %v1717_v2 = vld [vmem:[#allocation2 + $0x28] sm:$0xff] }
 0x342   : > { %3616 = vmatprep.subr.bf16.mxu1 %v4202_v3 }
 0x345   : > { %3617 = vmatpush3.bf16.msra.mxu1 %v4203_v4 }
 0x346   : > { %3618 = vmatprep.subr.bf16.mxu1 %v4204_v5 }
 0x349   : > { %3619 = vmatpush3.bf16.msra.mxu1 %v4205_v6 }
 0x34c   : > { %2340 = vmatmul.mubr.bf16.vlgmr.msra.gmra.mxu1 %v5193_v29  ;;  %v1715_v29 = vld [vmem:[#allocation2 + $0x8] sm:$0xff] }
 0x34d   : > { %2347 = vmatprep.mubr.bf16.mxu1 %v5198_v41 }
 0x354   : > { %2348 = vmatmul.mubr.bf16.gmra.mxu1 %v5200_v42 }
 0x3dd   : > { %v2235_v7 = vpop.f32.mrf.mxu0 }
 0x3df   : > { %v2237_v8 = vpop.f32.mrf.mxu0 }
 0x3e1   : > { %v2239_v9 = vpop.f32.mrf.mxu0 }
 0x3e3   : > { %v2241_v10 = vpop.f32.mrf.mxu0 }
 0x3e5   : > { %v2245_v14 = vpop.f32.mrf.mxu0 }
 0x3e7   : > { %v2247_v24 = vpop.f32.mrf.mxu0 }
 0x3e9   : > { %v2249_v33 = vpop.f32.mrf.mxu0 }
 0x3eb   : > { %v2251_v42 = vpop.f32.mrf.mxu0 }
 0x3ec   : > { %v2288_v12 = vpop.f32.mrf.mxu1 }
 0x3ed   : > { %v2289_v13 = vadd.f32 %v2288_v12, %v2235_v7 }
 0x3ee   : > { %v2290_v16 = vpop.f32.mrf.mxu1 }
 0x3ef   : > { %v2405_v17 = vadd.f32 %v2289_v13, %v1709_v11  ;;  %v2291_v19 = vadd.f32 %v2290_v16, %v2237_v8  ;;  %v1720_v8 = vld [vmem:[#allocation2 + $0x40] sm:$0xff] }
 0x3f0   : > { %v2292_v21 = vpop.f32.mrf.mxu1 }
 0x3f1   : > { %2417 = vst [vmem:[#allocation2 + $0x30] sm:$0xff] %v2405_v17  ;;  %v2406_v22 = vadd.f32 %v2291_v19, %v1710_v15  ;;  %v2293_v23 = vadd.f32 %v2292_v21, %v2239_v9 }
 0x3f2   : > { %v2294_v26 = vpop.f32.mrf.mxu1 }
 0x3f3   : > { %2418 = vst [vmem:[#allocation2] sm:$0xff] %v2406_v22  ;;  %v2408_v27 = vadd.f32 %v2293_v23, %v1712_v20  ;;  %v2295_v28 = vadd.f32 %v2294_v26, %v2241_v10 }
 0x3f4   : > { %v2298_v30 = vpop.f32.mrf.mxu1 }
 0x3f5   : > { %2420 = vst [vmem:[#allocation2 + $0x18] sm:$0xff] %v2408_v27  ;;  %v2409_v31 = vadd.f32 %v2295_v28, %v1713_v25  ;;  %v2299_v32 = vadd.f32 %v2298_v30, %v2245_v14 }
 0x3f6   : > { %v2300_v35 = vpop.f32.mrf.mxu1 }
 0x3f7   : > { %2421 = vst [vmem:[#allocation2 + $0x50] sm:$0xff] %v2409_v31  ;;  %v2411_v36 = vadd.f32 %v2299_v32, %v1715_v29  ;;  %v2301_v37 = vadd.f32 %v2300_v35, %v2247_v24 }
 0x3f8   : > { %v2302_v39 = vpop.f32.mrf.mxu1 }
 0x3f9   : > { %2423 = vst [vmem:[#allocation2 + $0x8] sm:$0xff] %v2411_v36  ;;  %v2412_v40 = vadd.f32 %v2301_v37, %v1716_v34  ;;  %v2303_v41 = vadd.f32 %v2302_v39, %v2249_v33 }
 0x3fa   : > { %v2304_v44 = vpop.f32.mrf.mxu1 }
 0x3fb   : > { %2424 = vst [vmem:[#allocation2 + $0x38] sm:$0xff] %v2412_v40  ;;  %v2414_v45 = vadd.f32 %v2303_v41, %v1718_v38  ;;  %v2305_v46 = vadd.f32 %v2304_v44, %v2251_v42 }
 0x3fd   : > { %2426 = vst [vmem:[#allocation2 + $0x48] sm:$0xff] %v2414_v45  ;;  %v2415_v47 = vadd.f32 %v2305_v46, %v1719_v43  ;;  %v3740_v48 = vpop.f32.mrf.mxu0 }
 0x3ff   : > { %2427 = vst [vmem:[#allocation2 + $0x10] sm:$0xff] %v2415_v47  ;;  %v2390_v49 = vpop.f32.mrf.mxu0 }
 0x401   : > { %v3741_v53 = vpop.f32.mrf.mxu0 }
 0x403   : > { %v2393_v60 = vpop.f32.mrf.mxu0 }
 0x40c   : > { %v3620_v50 = vpop.f32.mrf.mxu1 }
 0x40e   : > { %v3621_v51 = vpop.f32.mrf.mxu1 }
 0x40f   : > { %v3622_v52 = vadd.f32 %v3621_v51, %v3620_v50 }
 0x410   : > { %v3623_v55 = vpop.f32.mrf.mxu1 }
 0x411   : > { %v2391_v56 = vadd.f32 %v3622_v52, %v2390_v49 }
 0x412   : > { %v3624_v57 = vpop.f32.mrf.mxu1 }
 0x413   : > { %v2407_v58 = vadd.f32 %v2391_v56, %v1711_v54  ;;  %v3625_v59 = vadd.f32 %v3624_v57, %v3623_v55 }
 0x414   : > { %v3626_v62 = vpop.f32.mrf.mxu1 }
 0x415   : > { %2419 = vst [vmem:[#allocation2 + $0x58] sm:$0xff] %v2407_v58  ;;  %v2394_v18 = vadd.f32 %v3625_v59, %v2393_v60 }
 0x416   : > { %v3627_v63 = vpop.f32.mrf.mxu1 }
 0x417   : > { %v2410_v0 = vadd.f32 %v2394_v18, %v1714_v61  ;;  %v3628_v1 = vadd.f32 %v3627_v63, %v3626_v62 }
 0x418   : > { %v3629_v3 = vpop.f32.mrf.mxu1 }
 0x419   : > { %2422 = vst [vmem:[#allocation2 + $0x20] sm:$0xff] %v2410_v0  ;;  %v2399_v4 = vadd.f32 %v3740_v48, %v3628_v1 }
 0x41a   : > { %v3630_v5 = vpop.f32.mrf.mxu1 }
 0x41b   : > { %v2413_v6 = vadd.f32 %v2399_v4, %v1717_v2  ;;  %v3631_v7 = vadd.f32 %v3630_v5, %v3629_v3 }
 0x41d   : > { %2425 = vst [vmem:[#allocation2 + $0x28] sm:$0xff] %v2413_v6  ;;  %v2402_v9 = vadd.f32 %v3741_v53, %v3631_v7  ;;  %2432 = sbr.rel (%p3508_p8) target bundleno = 1928 (0x788), region = 148 }
 0x41f   : > { %v2416_v10 = vadd.f32 %v2402_v9, %v1720_v8 }
 0x421   : > { %2428 = vst [vmem:[#allocation2 + $0x40] sm:$0xff] %v2416_v10 }
 0x422   : > { %v2440_v11 = vld [vmem:[#allocation2 + $0x38] sm:$0xff]  ;;  %v2443_v12 = vld [vmem:[#allocation2 + $0x10] sm:$0xff]  ;;  %v4729_v14 = vmov 0.0   ;;  %v2439_v20 = vld [vmem:[#allocation2 + $0x8] sm:$0xff]  ;;  %vm4730_vm1 = vmmov 0   ;;  %v4731_v28 = vmov 0  }
 0x423   : > { %3742 = vmatprep.subr.bf16.mxu1 %v4729_v14  ;;  %v2452_v15 = vmax.f32 %v2440_v11, 0.0  ;;  %v2455_v16 = vmax.f32 %v2443_v12, 0.0  ;;  %v2442_v21 = vld [vmem:[#allocation2 + $0x48] sm:$0xff]  ;;  %3746 = vmatprep.mubr.msk.bf16.mxu1 %vm4730_vm1, %v4729_v14  ;;  %v2451_v23 = vmax.f32 %v2439_v20, 0.0  ;;  %v2434_v25 = vld [vmem:[#allocation2] sm:$0xff]  ;;  %v2437_v26 = vld [vmem:[#allocation2 + $0x50] sm:$0xff] }
 0x424   : > { %v2441_v13 = vld [vmem:[#allocation2 + $0x28] sm:$0xff]  ;;  %v2454_v24 = vmax.f32 %v2442_v21, 0.0  ;;  %v2435_v27 = vld [vmem:[#allocation2 + $0x58] sm:$0xff]  ;;  %2499 = vmatprep.mubr.bf16.mxu0 %v4731_v28  ;;  %4206 = vset.pattern.permute.xlu0 %v4731_v28  ;;  %v2446_v30 = vmax.f32 %v2434_v25, 0.0  ;;  %v2449_v31 = vmax.f32 %v2437_v26, 0.0  ;;  %v2438_v32 = vld [vmem:[#allocation2 + $0x20] sm:$0xff] }
 0x425   : > { %v2453_v19 = vmax.f32 %v2441_v13, 0.0  ;;  %v2461_v29 = vpack.c.bf16 %v2455_v16, %v2452_v15  ;;  %v2447_v33 = vmax.f32 %v2435_v27, 0.0  ;;  %v2433_v34 = vld [vmem:[#allocation2 + $0x30] sm:$0xff]  ;;  %v2436_v35 = vld [vmem:[#allocation2 + $0x18] sm:$0xff]  ;;  %v2450_v38 = vmax.f32 %v2438_v32, 0.0  ;;  %v4211_v49 = vld [vmem:[#allocation14 + $0x70] sm:$0xff]  }
 0x426   : > { %v2460_v37 = vpack.c.bf16 %v2454_v24, %v2451_v23  ;;  %v2445_v39 = vmax.f32 %v2433_v34, 0.0  ;;  %v2548_v40 = vld [vmem:[%s5380_s6] sm:$0x3]  ;;  %v2458_v41 = vpack.c.bf16 %v2449_v31, %v2446_v30  ;;  %v2448_v42 = vmax.f32 %v2436_v35, 0.0  ;;  %v4208_v45 = vld [vmem:[#allocation14 + $0x78] sm:$0xff]   ;;  %v4210_v50 = vld [vmem:[#allocation14 + $0xb0] sm:$0xff]  }
 0x427   : > { %2479 = vmatprep.subr.bf16.mxu0 %v2461_v29  ;;  %2551 = vperm.xlu0 %4206, %v2548_v40   ;;  %v2459_v43 = vpack.c.bf16 %v2450_v38, %v2447_v33  ;;  %v2463_v46 = vld [vmem:[#allocation12] sm:$0x1]  ;;  %v4212_v51 = vld [vmem:[#allocation14 + $0x30] sm:$0xff]   ;;  %v4214_v52 = vld [vmem:[#allocation14 + $0x68] sm:$0xff]   ;;  %vm2839_vm2 = vcmask 1041408  }
 0x428   : > { %v2444_v17 = vld [vmem:[#allocation2 + $0x40] sm:$0xff]  ;;  %2480 = vmatpush1.bf16.msra.mxu0 %v2460_v37  ;;  %v2457_v44 = vpack.c.bf16 %v2448_v42, %v2445_v39  ;;  %v4207_v47 = vld [vmem:[#allocation14 + $0xb8] sm:$0xff]   ;;  %v4217_v55 = vld [vmem:[#allocation14 + $0x60] sm:$0xff]  }
 0x429   : > { %v2456_v22 = vmax.f32 %v2444_v17, 0.0  ;;  %2481 = vmatprep.subr.bf16.mxu0 %v2458_v41  ;;  %v4209_v48 = vld [vmem:[#allocation14 + $0x38] sm:$0xff]   ;;  %v4213_v53 = vld [vmem:[#allocation14 + $0xa8] sm:$0xff]   ;;  %v4216_v56 = vld [vmem:[#allocation14 + $0xa0] sm:$0xff]  }
 0x42a   : > { %v4215_v54 = vld [vmem:[#allocation14 + $0x28] sm:$0xff]   ;;  %v4218_v57 = vld [vmem:[#allocation14 + $0x20] sm:$0xff]   ;;  %v4220_v58 = vld [vmem:[#allocation14 + $0x58] sm:$0xff]  }
 0x42b   : > { %v2462_v36 = vpack.c.bf16 %v2456_v22, %v2453_v19  ;;  %v4219_v59 = vld [vmem:[#allocation14 + $0x98] sm:$0xff]   ;;  %v4223_v61 = vld [vmem:[#allocation14 + $0x50] sm:$0xff]   ;;  %v4225_v63 = vld [vmem:[#allocation14 + $0x88] sm:$0xff]  }
 0x42c   : > { %2482 = vmatpush1.bf16.msra.mxu0 %v2457_v44  ;;  %v4221_v60 = vld [vmem:[#allocation14 + $0x18] sm:$0xff]   ;;  %v4222_v62 = vld [vmem:[#allocation14 + $0x90] sm:$0xff]   ;;  %v4226_v0 = vld [vmem:[#allocation14 + $0x48] sm:$0xff]  }
 0x42d   : > { %3743 = vmatpush3.bf16.msra.mxu1 %v2462_v36  ;;  %3645 = vmatprep.subr.bf16.mxu0 %v4208_v45  ;;  %v4224_v18 = vld [vmem:[#allocation14 + $0x10] sm:$0xff]   ;;  %v4227_v1 = vld [vmem:[#allocation14 + $0x8] sm:$0xff]   ;;  %v4228_v2 = vld [vmem:[#allocation14 + $0x80] sm:$0xff]  }
 0x42e   : > { %3744 = vmatprep.subr.bf16.mxu1 %v4729_v14  ;;  %v4229_v3 = vld [vmem:[#allocation14 + $0x40] sm:$0xff]   ;;  %v4232_v23 = vld [vmem:[#allocation20 + $0x30] sm:$0xff]   ;;  %v4233_v24 = vld [vmem:[#allocation20 + $0x28] sm:$0xff]  }
 0x42f   : > { %3509 = vmatmul.mubr.msk.bf16.vlgmr.msra.gmra.mxu0 %vm1558_vm0, %v2463_v46  ;;  %v4230_v4 = vld [vmem:[#allocation14] sm:$0xff]   ;;  %v4236_v27 = vld [vmem:[#allocation20 + $0x10] sm:$0xff]   ;;  %v4237_v28 = vld [vmem:[#allocation20 + $0x8] sm:$0xff]  }
 0x430   : > { %3646 = vmatpush3.bf16.msra.mxu0 %v4209_v48  ;;  %v4231_v22 = vld [vmem:[#allocation20 + $0x38] sm:$0xff]   ;;  %v4234_v25 = vld [vmem:[#allocation20 + $0x20] sm:$0xff]   ;;  %v4241_v32 = vld [vmem:[#allocation23 + $0x28] sm:$0xff]  }
 0x431   : > { %3745 = vmatpush3.bf16.msra.mxu1 %v2459_v43  ;;  %3647 = vmatprep.subr.bf16.mxu0 %v4211_v49  ;;  %v4235_v26 = vld [vmem:[#allocation20 + $0x18] sm:$0xff]   ;;  %v4238_v29 = vld [vmem:[#allocation20] sm:$0xff]  }
 0x432   : > { %3750 = vmatprep.subr.bf16.mxu1 %v4729_v14  ;;  %v4239_v30 = vld [vmem:[#allocation23 + $0x38] sm:$0xff]   ;;  %v4240_v31 = vld [vmem:[#allocation23 + $0x30] sm:$0xff]   ;;  %v4242_v33 = vld [vmem:[#allocation23 + $0x20] sm:$0xff]  }
 0x433   : > { %v4243_v34 = vld [vmem:[#allocation23 + $0x18] sm:$0xff]   ;;  %v4244_v35 = vld [vmem:[#allocation23 + $0x10] sm:$0xff]  }
 0x434   : > { %3747 = vmatmul.mubr.msk.bf16.vlgmr.msra.gmra.mxu1 %vm1558_vm0, %v2463_v46  ;;  %3648 = vmatpush3.bf16.msra.mxu0 %v4212_v51  ;;  %v3511_v40 = vld [vmem:[#allocation15] ss:$0 sm:$0xff] }
 0x435   : > { %3751 = vmatpush3.bf16.msra.mxu1 %v4207_v47  ;;  %3766 = vmatprep.mubr.msk.bf16.mxu1 %vm4730_vm1, %v4729_v14 }
 0x436   : > { %3752 = vmatprep.subr.bf16.mxu1 %v4729_v14  ;;  %3649 = vmatprep.subr.bf16.mxu0 %v4214_v52 }
 0x438   : > { %3650 = vmatpush3.bf16.msra.mxu0 %v4215_v54 }
 0x439   : > { %3753 = vmatpush3.bf16.msra.mxu1 %v4210_v50  ;;  %3651 = vmatprep.subr.bf16.mxu0 %v4217_v55 }
 0x43a   : > { %3754 = vmatprep.subr.bf16.mxu1 %v4729_v14 }
 0x43c   : > { %3652 = vmatpush3.bf16.msra.mxu0 %v4218_v57 }
 0x43d   : > { %3755 = vmatpush3.bf16.msra.mxu1 %v4213_v53  ;;  %3653 = vmatprep.subr.bf16.mxu0 %v4220_v58 }
 0x43e   : > { %3756 = vmatprep.subr.bf16.mxu1 %v4729_v14 }
 0x440   : > { %3654 = vmatpush3.bf16.msra.mxu0 %v4221_v60 }
 0x441   : > { %3757 = vmatpush3.bf16.msra.mxu1 %v4216_v56  ;;  %3655 = vmatprep.subr.bf16.mxu0 %v4223_v61 }
 0x442   : > { %3758 = vmatprep.subr.bf16.mxu1 %v4729_v14 }
 0x444   : > { %3656 = vmatpush3.bf16.msra.mxu0 %v4224_v18 }
 0x445   : > { %3759 = vmatpush3.bf16.msra.mxu1 %v4219_v59  ;;  %3657 = vmatprep.subr.bf16.mxu0 %v4226_v0 }
 0x446   : > { %3760 = vmatprep.subr.bf16.mxu1 %v4729_v14 }
 0x448   : > { %3658 = vmatpush3.bf16.msra.mxu0 %v4227_v1 }
 0x449   : > { %3761 = vmatpush3.bf16.msra.mxu1 %v4222_v62  ;;  %3659 = vmatprep.subr.bf16.mxu0 %v4229_v3  ;;  %v3536_v3 = vld [vmem:[#allocation17] ss:$0 sm:$0xff] }
 0x44a   : > { %3762 = vmatprep.subr.bf16.mxu1 %v4729_v14 }
 0x44c   : > { %3660 = vmatpush3.bf16.msra.mxu0 %v4230_v4 }
 0x44d   : > { %3763 = vmatpush3.bf16.msra.mxu1 %v4225_v63  ;;  %3770 = vmatprep.subr.bf16.mxu0 %v4729_v14 }
 0x44e   : > { %3764 = vmatprep.subr.bf16.mxu1 %v4729_v14 }
 0x451   : > { %3765 = vmatpush3.bf16.msra.mxu1 %v4228_v2 }
 0x452   : > { %3790 = vmatprep.subr.bf16.mxu1 %v4729_v14 }
 0x4a2   : > { %v2552_v5 = vpop.permute.xlu0 %2551 }
 0x4ef   : > { %v2501_v7 = vpop.f32.mrf.mxu0 }
 0x4f0   : > { %v2554_v9 = vmul.f32 %v2552_v5, %v2501_v7 }
 0x4f1   : > { %v2503_v10 = vpop.f32.mrf.mxu0 }
 0x4f2   : > { %v2555_v13 = vmul.f32 %v2552_v5, %v2503_v10  ;;  %v2557_v19 = vpack.c.bf16 %v2554_v9, %v2554_v9  ;;  %v4245_v9 = vld [vmem:[#allocation23 + $0x8] sm:$0xff]   ;;  %v4246_v10 = vld [vmem:[#allocation23] sm:$0xff]  }
 0x4f3   : > { %v2505_v15 = vpop.f32.mrf.mxu0 }
 0x4f4   : > { %v2542_v6 = vpop.f32.mrf.mxu1  ;;  %v2558_v17 = vpack.c.bf16 %v2555_v13, %v2555_v13 }
 0x4f5   : > { %v2556_v8 = vmul.f32 %v2552_v5, %v2542_v6  ;;  %v2506_v20 = vpop.f32.mrf.mxu0  ;;  %v3537_v5 = vld [vmem:[#allocation18] ss:$0 sm:$0xff] }
 0x4f6   : > { %v3748_v11 = vpop.f32.mrf.mxu1  ;;  %2791 = vmatprep.mubr.bf16.mxu0 %v2558_v17 }
 0x4f7   : > { %v2559_v12 = vpack.c.bf16 %v2556_v8, %v2556_v8  ;;  %2792 = vmatmul.mubr.bf16.vlgmr.msra.gmra.mxu0 %v2557_v19  ;;  %v3538_v11 = vld [vmem:[#allocation21] ss:$0 sm:$0xff] }
 0x4f8   : > { %v2545_v16 = vpop.f32.mrf.mxu1  ;;  %3786 = vmatprep.mubr.msk.bf16.mxu0 %vm4730_vm1, %v4729_v14  ;;  %3771 = vmatpush3.bf16.msra.mxu0 %v4231_v22 }
 0x4f9   : > { %3767 = vmatmul.mubr.bf16.vlgmr.msra.gmra.mxu1 %v2559_v12  ;;  %3772 = vmatprep.subr.bf16.mxu0 %v4729_v14 }
 0x4fa   : > { %v3749_v21 = vpop.f32.mrf.mxu1  ;;  %3806 = vmatprep.mubr.msk.bf16.mxu1 %vm4730_vm1, %v4729_v14  ;;  %3791 = vmatpush3.bf16.msra.mxu1 %v4239_v30 }
 0x4fb   : > { %3792 = vmatprep.subr.bf16.mxu1 %v4729_v14  ;;  %v3547_v21 = vld [vmem:[#allocation24] ss:$0 sm:$0xff] }
 0x4fc   : > { %3773 = vmatpush3.bf16.msra.mxu0 %v4232_v23 }
 0x4fd   : > { %3774 = vmatprep.subr.bf16.mxu0 %v4729_v14 }
 0x4fe   : > { %3793 = vmatpush3.bf16.msra.mxu1 %v4240_v31 }
 0x4ff   : > { %3794 = vmatprep.subr.bf16.mxu1 %v4729_v14 }
 0x500   : > { %3775 = vmatpush3.bf16.msra.mxu0 %v4233_v24 }
 0x501   : > { %3776 = vmatprep.subr.bf16.mxu0 %v4729_v14 }
 0x502   : > { %3795 = vmatpush3.bf16.msra.mxu1 %v4241_v32 }
 0x503   : > { %3796 = vmatprep.subr.bf16.mxu1 %v4729_v14 }
 0x504   : > { %3777 = vmatpush3.bf16.msra.mxu0 %v4234_v25 }
 0x505   : > { %3778 = vmatprep.subr.bf16.mxu0 %v4729_v14 }
 0x506   : > { %3797 = vmatpush3.bf16.msra.mxu1 %v4242_v33 }
 0x507   : > { %3798 = vmatprep.subr.bf16.mxu1 %v4729_v14 }
 0x508   : > { %3779 = vmatpush3.bf16.msra.mxu0 %v4235_v26 }
 0x509   : > { %3780 = vmatprep.subr.bf16.mxu0 %v4729_v14 }
 0x50a   : > { %3799 = vmatpush3.bf16.msra.mxu1 %v4243_v34 }
 0x50b   : > { %3800 = vmatprep.subr.bf16.mxu1 %v4729_v14 }
 0x50c   : > { %3781 = vmatpush3.bf16.msra.mxu0 %v4236_v27 }
 0x50d   : > { %3782 = vmatprep.subr.bf16.mxu0 %v4729_v14 }
 0x50e   : > { %3801 = vmatpush3.bf16.msra.mxu1 %v4244_v35 }
 0x50f   : > { %3802 = vmatprep.subr.bf16.mxu1 %v4729_v14 }
 0x510   : > { %3783 = vmatpush3.bf16.msra.mxu0 %v4237_v28 }
 0x511   : > { %3784 = vmatprep.subr.bf16.mxu0 %v4729_v14 }
 0x512   : > { %3803 = vmatpush3.bf16.msra.mxu1 %v4245_v9 }
 0x513   : > { %3804 = vmatprep.subr.bf16.mxu1 %v4729_v14 }
 0x514   : > { %3785 = vmatpush3.bf16.msra.mxu0 %v4238_v29 }
 0x516   : > { %3805 = vmatpush3.bf16.msra.mxu1 %v4246_v10 }
 0x5b7   : > { %v3661_v38 = vpop.f32.mrf.mxu0 }
 0x5b9   : > { %v2833_v36 = vpop.f32.mrf.mxu1  ;;  %v3662_v41 = vpop.f32.mrf.mxu0 }
 0x5ba   : > { %v3663_v42 = vadd.f32 %v3662_v41, %v3661_v38 }
 0x5bb   : > { %v3768_v37 = vpop.f32.mrf.mxu1  ;;  %v3664_v44 = vpop.f32.mrf.mxu0 }
 0x5bc   : > { %v2794_v45 = vadd.f32 %v3663_v42, %v3511_v40 }
 0x5bd   : > { %v2836_v39 = vpop.f32.mrf.mxu1  ;;  %v3665_v46 = vpop.f32.mrf.mxu0 }
 0x5be   : > { %v2834_v47 = vadd.f32 %v2833_v36, %v2794_v45 }
 0x5bf   : > { %v3769_v43 = vpop.f32.mrf.mxu1 }
 0x5c0   : > { %v2840_v48 = vsel %vm2839_vm2, %v2834_v47, 0.0 }
 0x5c1   : > { %v2841_v49 = vrot.slane %v2840_v48, 4 }
 0x5c3   : > { %v2842_v50 = vadd.f32 %v2841_v49, %v2840_v48 }
 0x5c5   : > { %v2843_v51 = vrot.slane %v2842_v50, 2 }
 0x5c7   : > { %v2844_v52 = vadd.f32 %v2843_v51, %v2842_v50 }
 0x5c9   : > { %v2845_v53 = vrot.slane %v2844_v52, 1 }
 0x5cb   : > { %v2846_v54 = vadd.f32 %v2845_v53, %v2844_v52 }
 0x5cd   : > { %v2848_v55 = vmul.f32 0.5, %v2846_v54 }
 0x5cf   : > { %v2849_v56 = vsub.f32 %v2834_v47, %v2848_v55 }
 0x5d1   : > { %v2850_v57 = vmul.f32 %v2849_v56, %v2849_v56 }
 0x5d3   : > { %v2851_v58 = vsel %vm2839_vm2, %v2850_v57, 0.0 }
 0x5d4   : > { %v2852_v59 = vrot.slane %v2851_v58, 4 }
 0x5d6   : > { %v2853_v60 = vadd.f32 %v2852_v59, %v2851_v58 }
 0x5d8   : > { %v2854_v61 = vrot.slane %v2853_v60, 2 }
 0x5da   : > { %v2855_v62 = vadd.f32 %v2854_v61, %v2853_v60 }
 0x5dc   : > { %v2856_v18 = vrot.slane %v2855_v62, 1 }
 0x5de   : > { %v2857_v63 = vadd.f32 %v2856_v18, %v2855_v62 }
 0x5e0   : > { %v2858_v0 = vmul.f32 0.5, %v2857_v63 }
 0x5e2   : > { %v2859_v1 = vadd.f32 1e-05, %v2858_v0 }
 0x5e4   : > { %4247 = vrsqrt.f32 %v2859_v1 }
 0x5f1   : > { %v4248_v2 = vpop.eup %4247 }
 0x5f2   : > { %v2861_v4 = vmul.f32 %v4248_v2, %v2849_v56 }
 0x5f4   : > { %v2869_v6 = vmul.f32 %v3536_v3, %v2861_v4 }
 0x5f6   : > { %v2877_v7 = vadd.f32 %v3537_v5, %v2869_v6 }
 0x5f8   : > { %v2878_v8 = vpack.c.bf16 %v2877_v7, %v2877_v7 }
 0x5fa   : > { %3787 = vmatmul.mubr.bf16.vlgmr.msra.gmra.mxu0 %v2878_v8 }
 0x6ba   : > { %v2984_v12 = vpop.f32.mrf.mxu0 }
 0x6bb   : > { %v2985_v13 = vadd.f32 %v3538_v11, %v2984_v12 }
 0x6bc   : > { %v3788_v15 = vpop.f32.mrf.mxu0 }
 0x6bd   : > { %v2990_v16 = vmax.f32 %v2985_v13, 0.0 }
 0x6be   : > { %v2987_v17 = vpop.f32.mrf.mxu0 }
 0x6bf   : > { %v2991_v19 = vpack.c.bf16 %v2990_v16, %v2990_v16 }
 0x6c0   : > { %v3789_v20 = vpop.f32.mrf.mxu0 }
 0x6c1   : > { %3807 = vmatmul.mubr.bf16.vlgmr.msra.gmra.mxu1 %v2991_v19 }
 0x781   : > { %v3097_v22 = vpop.f32.mrf.mxu1 }
 0x782   : > { %v3098_v23 = vadd.f32 %v3547_v21, %v3097_v22 }
 0x783   : > { %v3808_v24 = vpop.f32.mrf.mxu1 }
 0x784   : > { %3103 = vst [vmem:[#allocation26] sm:$0x3] %v3098_v23 }
 0x785   : > { %v3100_v25 = vpop.f32.mrf.mxu1 }
 0x787   : > { %v3809_v26 = vpop.f32.mrf.mxu1 }
 0x788 PF: > { %p3938_p12 = scmp.eq.s32.totalorder %s4839_s25, 8  ;;  %s4732_s5 = smov [#allocation26]  }
 0x789   : > { %s3111_s29 = sshll.u32 %s4732_s5, 4  ;;  %s3112_s29 = int_to_ptr.vmem [resolvable:$true] %s3111_s29 }
 0x78a   : > { %s4617_s1 = scalar_lea.vmem %s3112_s29, 32  ;;  %p4624_p11 = scmp.lt.s32.totalorder %s3112_s29, %s3112_s29 }
 0x78b   : > { %p4618_p1 = scmp.ne.s32.totalorder %s3112_s29, %s4617_s1  ;;  %p4625_p3 = scmp.lt.s32.totalorder %s4617_s1, %s4617_s1 }
 0x78d   : > { %p4619_p13 = pnand %p4618_p1, %p3938_p12  ;;  %p4626_p7 = por %p4625_p3, %p4624_p11 }
 0x78f   : > { %p4620_p0 = pneg %p4619_p13 }
 0x791   : > { %p4627_p6 = pnand %p4626_p7, %p4620_p0 }
 0x793   : > { %4630 = shalt.err (!%p4627_p6)
}
 0x794   : > { %s5381_s4 = sld [smem:[#allocation47_spill]] }
 0x79a   : > { %3866 = dma.vmem_to_hbm [thread:$0]  (%p3938_p12), %s3112_s29, 32, %s5381_s4, [#allocation5]  }
 0x79b   : > { %4690 = dma.done.wait (%p3938_p12), [#allocation5], 32  }
 0x79c   : > { %4692 = vsyncadd (%p3938_p12), [#allocation5], 4294967264 }
 0x79d PF: > { %p34_p9 = scmp.ge.s32.totalorder %s4910_s30, 11   ;;  %s5382_s21 = smov %s4699_s22 }
 0x79e   : > { %s5383_s22 = smov %s4703_s23  ;;  %s5384_s23 = smov %s4921_s7 }
 0x79f   : > { %s5385_s24 = smov %s4910_s30  ;;  %36 = sbr.rel (!%p34_p9) target bundleno = 23 (0x17), region = 192 }
 0x7a4   :  { %3124 = vsyncpa [#allocation4], 1 }
 0x7a5   :  { %3126 = vsyncpa [#allocation4 + $0x1], 1 }
 0x7a6   :  { %3127 = vsyncpa [#allocation7], 1 }
 0x7a7   :  { %3129 = vsyncpa [#allocation7 + $0x1], 1 }
 0x7a8   :  { %3130 = vsyncpa [#allocation10], 1 }
 0x7a9   :  { %3131 = vsyncpa [#allocation13], 1 }
 0x7aa   :  { %3132 = vsyncpa [#allocation16], 1 }
 0x7ab   :  { %3133 = vsyncpa [#allocation19], 1 }
 0x7ac   :  { %3134 = vsyncpa [#allocation22], 1 }
 0x7ad   :  { %3135 = vsyncpa [#allocation25], 1 }
 0x7ae   :  { %3136 = vsyncpa [#allocation5], 1 }
 0x7af   :  { %3138 = vsyncpa [#allocation5 + $0x1], 1 }

</bundles_post_ra>
